<compile_context>
chip_gen: v5e
topology: v5e:2x2
jax: 0.10.0
libtpu: 0.0.40
codegen_flags: <defaults>
</compile_context>

<pallas_src>
import math

import jax
import jax.numpy as jnp
from jax.experimental import pallas as pl
from jax.experimental.pallas import tpu as pltpu

# ----------------------------- config (small) --------------------------------
BATCH = 2
SEQ = 8
DIM = 32
N_HEADS = 4
HEAD_DIM = DIM // N_HEADS
HIDDEN_DIM = 4 * DIM          # FFN hidden
N_LAYERS = 2
LN_EPS = 1e-12
NEG_INF = -1e30

# packed big-weight slab column offsets: [ Wqkv | Wo | W1 ]
_QKV_OFF = 0
_WO_OFF = 3 * DIM
_W1_OFF = 4 * DIM
BIGW_COLS = 4 * DIM + HIDDEN_DIM          # 256 (lane dense)

# packed small-vector slab rows (each row VEC_COLS lanes, data left-aligned)
_BQ, _BK, _BV, _BO, _LN1G, _LN1B, _B2, _LN2G, _LN2B, _B1 = range(10)
N_VEC_ROWS = 10
VEC_COLS = max(128, HIDDEN_DIM)           # 128


# ------------------------------ kernel helpers --------------------------------
def _layernorm(x, gamma, beta):
    mu = jnp.mean(x, axis=-1, keepdims=True)
    var = jnp.mean((x - mu) ** 2, axis=-1, keepdims=True)
    return (x - mu) * jax.lax.rsqrt(var + LN_EPS) * gamma + beta


def _erf_approx(z):
    # Abramowitz & Stegun 7.1.26, |err| <= 1.5e-7.  Uses only abs/exp/div/where
    # so it lowers on Mosaic without relying on a lax.erf lowering rule.
    a1, a2, a3, a4, a5 = (0.254829592, -0.284496736, 1.421413741,
                          -1.453152027, 1.061405429)
    p = 0.3275911
    az = jnp.abs(z)
    t = 1.0 / (1.0 + p * az)
    poly = ((((a5 * t + a4) * t + a3) * t + a2) * t + a1) * t
    e = 1.0 - poly * jnp.exp(-az * az)
    return jnp.where(z >= 0.0, e, -e)


def _gelu_erf(x):
    # torch.nn.functional.gelu (erf form), as used by the DistilBERT FFN.
    return 0.5 * x * (1.0 + _erf_approx(x * (1.0 / math.sqrt(2.0))))


# --------------------------------- kernel -------------------------------------
def transformer_stack_kernel(
    x_ref,        # (B*S, D)            input hidden states (fetched once)
    mask_ref,     # (B, 1, S)           additive attention mask (0 / -1e30)
    bigw_ref,     # (D, 4D + HIDDEN)    [ Wq*scale | Wk | Wv | Wo | W1 ] of this layer
    w2_ref,       # (HIDDEN, D)
    vec_ref,      # (10, VEC_COLS)      packed biases + LayerNorm params + b1
    out_ref,      # (B*S, D)
    h_sc,         # VMEM scratch (B*S, D): hidden state carried across layers
):
    l = pl.program_id(0)

    @pl.when(l == 0)
    def _():
        h_sc[...] = x_ref[...]

    x2 = h_sc[...]                           # (B*S, D)
    bigw = bigw_ref[...]                     # (D, 256) one dense load per layer
    vec = vec_ref[...]                       # (10, 128)

    # ---- fused QKV projection (scale pre-folded into the Q columns) ----
    qkv = jnp.dot(x2, bigw[:, _QKV_OFF:_QKV_OFF + 3 * DIM],
                  preferred_element_type=jnp.float32)               # (B*S, 3D)
    q = qkv[:, 0:DIM] + vec[_BQ:_BQ + 1, :DIM]
    k = qkv[:, DIM:2 * DIM] + vec[_BK:_BK + 1, :DIM]
    v = qkv[:, 2 * DIM:3 * DIM] + vec[_BV:_BV + 1, :DIM]
    q3 = q.reshape(BATCH, SEQ, DIM)
    k3 = k.reshape(BATCH, SEQ, DIM)
    v3 = v.reshape(BATCH, SEQ, DIM)

    # additive mask broadcast hoisted out of the head loop (done once per layer)
    mask_b = jnp.broadcast_to(mask_ref[...], (BATCH, SEQ, SEQ))

    # ---- multi-head self-attention ----
    # Static unroll over heads; each head is a single-batch-dim dot_general
    # (the known-good Mosaic path).  Head contexts are lane-concatenated and
    # projected through Wo with ONE matmul instead of four K=8 matmuls.
    ctxs = []
    for h in range(N_HEADS):
        lo = h * HEAD_DIM
        hi = lo + HEAD_DIM
        s = jnp.einsum("bqd,bkd->bqk", q3[:, :, lo:hi], k3[:, :, lo:hi],
                       preferred_element_type=jnp.float32)           # (B, S, S)
        s = s + mask_b
        smax = jnp.max(s, axis=-1, keepdims=True)
        p = jnp.exp(s - smax)
        p = p / jnp.sum(p, axis=-1, keepdims=True)      # exact divide (accuracy headroom)
        ctxs.append(jnp.einsum("bqk,bkd->bqd", p, v3[:, :, lo:hi],
                               preferred_element_type=jnp.float32))  # (B, S, Hd)

    ctx = jnp.concatenate(ctxs, axis=-1).reshape(BATCH * SEQ, DIM)    # (B*S, D)
    attn2 = jnp.dot(ctx, bigw[:, _WO_OFF:_WO_OFF + DIM],
                    preferred_element_type=jnp.float32) + vec[_BO:_BO + 1, :DIM]

    # ---- residual + LayerNorm ----
    sa = _layernorm(attn2 + x2, vec[_LN1G:_LN1G + 1, :DIM], vec[_LN1B:_LN1B + 1, :DIM])

    # ---- FFN (erf GELU) ----
    h1 = jnp.dot(sa, bigw[:, _W1_OFF:_W1_OFF + HIDDEN_DIM],
                 preferred_element_type=jnp.float32) + vec[_B1:_B1 + 1, :HIDDEN_DIM]
    h1 = _gelu_erf(h1)
    ffn = jnp.dot(h1, w2_ref[...],
                  preferred_element_type=jnp.float32) + vec[_B2:_B2 + 1, :DIM]

    # ---- residual + LayerNorm ----
    y = _layernorm(ffn + sa, vec[_LN2G:_LN2G + 1, :DIM], vec[_LN2B:_LN2B + 1, :DIM])

    h_sc[...] = y        # VMEM-resident carry to the next layer
    out_ref[...] = y     # resident output block (constant index map); last write wins


# ------------------------------ wrapper ---------------------------------------
def pack_layer_params(params):
    """Per-layer param dicts -> stacked lane-dense slabs (3 DMA descriptors/layer).

    bigw: (L, D, 4D+HIDDEN) = [ Wq*scale | Wk | Wv | Wo | W1 ]
    w2  : (L, HIDDEN, D)
    vecs: (L, 10, VEC_COLS) = bq*scale,bk,bv,bo,ln1_g,ln1_b,b2,ln2_g,ln2_b,b1 (padded)
    The 1/sqrt(HEAD_DIM) attention scale is folded into Wq / bq here (one-time).
    """
    scale = 1.0 / math.sqrt(HEAD_DIM)

    def pad_row(v):
        return jnp.pad(v, ((0, 0), (0, VEC_COLS - v.shape[1])))

    bigw, w2, vecs = [], [], []
    for p in params:
        bigw.append(jnp.concatenate(
            [p["wq"] * scale, p["wk"], p["wv"], p["wo"], p["w1"]], axis=1))
        w2.append(p["w2"])
        vecs.append(jnp.concatenate([
            pad_row(p["bq"] * scale), pad_row(p["bk"]), pad_row(p["bv"]),
            pad_row(p["bo"]), pad_row(p["ln1_g"]), pad_row(p["ln1_b"]),
            pad_row(p["b2"]), pad_row(p["ln2_g"]), pad_row(p["ln2_b"]),
            pad_row(p["b1"]),
        ], axis=0))
    return jnp.stack(bigw), jnp.stack(w2), jnp.stack(vecs)


def transformer_forward(hidden_states, attention_mask, params):
    """Stack of N_LAYERS TransformerBlocks (default path: returns last_hidden_state)."""
    B, S, D = hidden_states.shape
    L = len(params)
    bigw, w2, vecs = pack_layer_params(params)

    x2 = hidden_states.reshape(B * S, D).astype(jnp.float32)
    mask_add = jnp.where(attention_mask.reshape(B, 1, S) == 0.0,
                         NEG_INF, 0.0).astype(jnp.float32)

    const2 = lambda l: (0, 0)
    const3 = lambda l: (0, 0, 0)
    per_layer = lambda l: (l, 0, 0)

    out2 = pl.pallas_call(
        transformer_stack_kernel,
        out_shape=jax.ShapeDtypeStruct((B * S, D), jnp.float32),
        grid=(L,),
        in_specs=[
            pl.BlockSpec((B * S, D), const2),                       # x (fetched once)
            pl.BlockSpec((B, 1, S), const3),                        # additive mask
            pl.BlockSpec((None, D, BIGW_COLS), per_layer),          # bigw[l]
            pl.BlockSpec((None, HIDDEN_DIM, D), per_layer),         # w2[l]
            pl.BlockSpec((None, N_VEC_ROWS, VEC_COLS), per_layer),  # vecs[l]
        ],
        out_specs=pl.BlockSpec((B * S, D), const2),                 # resident across layers
        scratch_shapes=[pltpu.VMEM((B * S, D), jnp.float32)],       # hidden-state carry
        compiler_params=pltpu.CompilerParams(
            dimension_semantics=("arbitrary",),                     # layer axis carries state
        ),
    )(x2, mask_add, bigw, w2, vecs)
    return out2.reshape(B, S, D)


# --------------------------- deterministic init --------------------------------
def init_params(key):
    params = []
    for l in range(N_LAYERS):
        k = jax.random.fold_in(key, l)
        ks = jax.random.split(k, 6)

        def lin(kk, fan_in, fan_out):
            return 0.02 * jax.random.normal(kk, (fan_in, fan_out), jnp.float32)

        p = {
            "wq": lin(ks[0], DIM, DIM), "bq": jnp.zeros((1, DIM), jnp.float32),
            "wk": lin(ks[1], DIM, DIM), "bk": jnp.zeros((1, DIM), jnp.float32),
            "wv": lin(ks[2], DIM, DIM), "bv": jnp.zeros((1, DIM), jnp.float32),
            "wo": lin(ks[3], DIM, DIM), "bo": jnp.zeros((1, DIM), jnp.float32),
            "ln1_g": jnp.ones((1, DIM), jnp.float32),
            "ln1_b": jnp.zeros((1, DIM), jnp.float32),
            "w1": lin(ks[4], DIM, HIDDEN_DIM), "b1": jnp.zeros((1, HIDDEN_DIM), jnp.float32),
            "w2": lin(ks[5], HIDDEN_DIM, DIM), "b2": jnp.zeros((1, DIM), jnp.float32),
            "ln2_g": jnp.ones((1, DIM), jnp.float32),
            "ln2_b": jnp.zeros((1, DIM), jnp.float32),
        }
        params.append(p)
    return params


# ------------------------------ pure-JAX reference ------------------------------
def _ref_block(x, mask, p):
    B, S, D = x.shape

    def ln(v, g, b):
        mu = v.mean(-1, keepdims=True)
        var = ((v - mu) ** 2).mean(-1, keepdims=True)
        return (v - mu) / jnp.sqrt(var + LN_EPS) * g + b

    q = x @ p["wq"] + p["bq"]
    k = x @ p["wk"] + p["bk"]
    v = x @ p["wv"] + p["bv"]

    def split(t):  # (B,S,D) -> (B,H,S,Hd)
        return t.reshape(B, S, N_HEADS, HEAD_DIM).transpose(0, 2, 1, 3)

    qh, kh, vh = split(q) / math.sqrt(HEAD_DIM), split(k), split(v)
    scores = jnp.einsum("bhqd,bhkd->bhqk", qh, kh)
    scores = scores + jnp.where(mask[:, None, None, :] == 0, NEG_INF, 0.0)
    probs = jax.nn.softmax(scores, axis=-1)
    ctx = jnp.einsum("bhqk,bhkd->bhqd", probs, vh).transpose(0, 2, 1, 3).reshape(B, S, D)
    attn_out = ctx @ p["wo"] + p["bo"]
    sa = ln(attn_out + x, p["ln1_g"], p["ln1_b"])
    h1 = sa @ p["w1"] + p["b1"]
    h1 = 0.5 * h1 * (1.0 + jax.lax.erf(h1 / math.sqrt(2.0)))   # exact erf GELU
    ffn = h1 @ p["w2"] + p["b2"]
    return ln(ffn + sa, p["ln2_g"], p["ln2_b"])


def _ref_forward(x, mask, params):
    for p in params:
        x = _ref_block(x, mask, p)
    return x


# ----------------------------------- main --------------------------------------
if __name__ == "__main__":
    key = jax.random.PRNGKey(0)
    k_x, k_p = jax.random.split(key)

    hidden_states = jax.random.normal(k_x, (BATCH, SEQ, DIM), jnp.float32)
    attention_mask = jnp.ones((BATCH, SEQ), jnp.float32)
    attention_mask = attention_mask.at[1, -1].set(0.0)   # exercise the masking path
    params = init_params(k_p)

    out = transformer_forward(hidden_states, attention_mask, params)
    out = jax.block_until_ready(out)

    ref = _ref_forward(hidden_states, attention_mask, params)
    assert out.shape == (BATCH, SEQ, DIM)
    # tolerance covers the in-kernel erf polynomial (<=1.5e-7) and EUP rsqrt in LayerNorm
    assert jnp.allclose(out, ref, atol=1e-3, rtol=1e-3), "mismatch vs JAX reference"

    print("KERNEL_OK")
</pallas_src>

<mosaic_0001>
module attributes {stable_mosaic.version = 11 : i64} {
  func.func @transformer_stack_kernel(%arg0: i32, %arg1: memref<16x32xf32, #tpu.memory_space<vmem>>, %arg2: memref<2x1x8xf32, #tpu.memory_space<vmem>>, %arg3: memref<1x32x256xf32, #tpu.memory_space<vmem>>, %arg4: memref<1x128x32xf32, #tpu.memory_space<vmem>>, %arg5: memref<1x10x128xf32, #tpu.memory_space<vmem>>, %arg6: memref<16x32xf32, #tpu.memory_space<vmem>>, %arg7: memref<16x32xf32, #tpu.memory_space<vmem>>) attributes {dimension_semantics = [#tpu.dimension_semantics<arbitrary>], iteration_bounds = array<i64: 2>, scalar_prefetch = 0 : i64, scratch_operands = 1 : i64, tpu.core_type = #tpu.core_type<tc>, window_params = [{pipeline_mode = #tpu.pipeline_mode<synchronous>, transform_indices = @transform_0, window_bounds = array<i64: 16, 32>}, {pipeline_mode = #tpu.pipeline_mode<synchronous>, transform_indices = @transform_1, window_bounds = array<i64: 2, 1, 8>}, {transform_indices = @transform_2, window_bounds = array<i64: 1, 32, 256>}, {transform_indices = @transform_3, window_bounds = array<i64: 1, 128, 32>}, {transform_indices = @transform_4, window_bounds = array<i64: 1, 10, 128>}, {pipeline_mode = #tpu.pipeline_mode<synchronous>, transform_indices = @transform_5, window_bounds = array<i64: 16, 32>}]} {
    %c0_i32 = arith.constant 0 : i32
    %0 = arith.cmpi eq, %arg0, %c0_i32 : i32
    %1 = arith.extui %0 : i1 to i32
    %c0_i32_0 = arith.constant 0 : i32
    %2 = arith.cmpi ne, %1, %c0_i32_0 : i32
    scf.if %2 {
      %c0_62 = arith.constant 0 : index
      %c0_63 = arith.constant 0 : index
      %198 = vector.load %arg1[%c0_62, %c0_63] : memref<16x32xf32, #tpu.memory_space<vmem>>, vector<16x32xf32>
      %c0_64 = arith.constant 0 : index
      %c0_65 = arith.constant 0 : index
      %199 = vector.load %arg7[%c0_64, %c0_65] : memref<16x32xf32, #tpu.memory_space<vmem>>, vector<16x32xf32>
      tpu.vector_store %arg7[%c0_64, %c0_65], %198 {strides = array<i32>} : memref<16x32xf32, #tpu.memory_space<vmem>>, vector<16x32xf32>,
    } else {
    }
    %c0 = arith.constant 0 : index
    %c0_1 = arith.constant 0 : index
    %3 = vector.load %arg7[%c0, %c0_1] : memref<16x32xf32, #tpu.memory_space<vmem>>, vector<16x32xf32>
    %c0_2 = arith.constant 0 : index
    %c0_3 = arith.constant 0 : index
    %c0_4 = arith.constant 0 : index
    %4 = vector.load %arg3[%c0_2, %c0_3, %c0_4] : memref<1x32x256xf32, #tpu.memory_space<vmem>>, vector<1x32x256xf32>
    %5 = vector.shape_cast %4 : vector<1x32x256xf32> to vector<32x256xf32>
    %c0_5 = arith.constant 0 : index
    %c0_6 = arith.constant 0 : index
    %c0_7 = arith.constant 0 : index
    %6 = vector.load %arg5[%c0_5, %c0_6, %c0_7] : memref<1x10x128xf32, #tpu.memory_space<vmem>>, vector<1x10x128xf32>
    %7 = vector.shape_cast %6 : vector<1x10x128xf32> to vector<10x128xf32>
    %8 = vector.extract_strided_slice %5 {offsets = [0, 0], sizes = [32, 96], strides = [1, 1]} : vector<32x256xf32> to vector<32x96xf32>
    %cst = arith.constant dense<0.000000e+00> : vector<16x96xf32>
    %9 = tpu.matmul %3, %8, %cst {dimension_numbers = #tpu.dot_dimension_numbers<[1], [0], [0], [1], [0, 0, 1, 1], [], []>} : vector<16x32xf32>, vector<32x96xf32>, vector<16x96xf32> -> vector<16x96xf32>
    %10 = vector.extract_strided_slice %9 {offsets = [0, 0], sizes = [16, 32], strides = [1, 1]} : vector<16x96xf32> to vector<16x32xf32>
    %11 = vector.extract_strided_slice %7 {offsets = [0, 0], sizes = [1, 32], strides = [1, 1]} : vector<10x128xf32> to vector<1x32xf32>
    %12 = vector.broadcast %11 : vector<1x32xf32> to vector<16x32xf32>
    %13 = arith.addf %10, %12 : vector<16x32xf32>
    %14 = vector.extract_strided_slice %9 {offsets = [0, 32], sizes = [16, 32], strides = [1, 1]} : vector<16x96xf32> to vector<16x32xf32>
    %15 = vector.extract_strided_slice %7 {offsets = [1, 0], sizes = [1, 32], strides = [1, 1]} : vector<10x128xf32> to vector<1x32xf32>
    %16 = vector.broadcast %15 : vector<1x32xf32> to vector<16x32xf32>
    %17 = arith.addf %14, %16 : vector<16x32xf32>
    %18 = vector.extract_strided_slice %9 {offsets = [0, 64], sizes = [16, 32], strides = [1, 1]} : vector<16x96xf32> to vector<16x32xf32>
    %19 = vector.extract_strided_slice %7 {offsets = [2, 0], sizes = [1, 32], strides = [1, 1]} : vector<10x128xf32> to vector<1x32xf32>
    %20 = vector.broadcast %19 : vector<1x32xf32> to vector<16x32xf32>
    %21 = arith.addf %18, %20 : vector<16x32xf32>
    %22 = vector.shape_cast %13 : vector<16x32xf32> to vector<2x8x32xf32>
    %23 = vector.shape_cast %17 : vector<16x32xf32> to vector<2x8x32xf32>
    %24 = vector.shape_cast %21 : vector<16x32xf32> to vector<2x8x32xf32>
    %c0_8 = arith.constant 0 : index
    %c0_9 = arith.constant 0 : index
    %c0_10 = arith.constant 0 : index
    %25 = vector.load %arg2[%c0_8, %c0_9, %c0_10] : memref<2x1x8xf32, #tpu.memory_space<vmem>>, vector<2x1x8xf32>
    %26 = vector.shape_cast %25 : vector<2x1x8xf32> to vector<2x1x8xf32>
    %27 = vector.broadcast %26 : vector<2x1x8xf32> to vector<2x8x8xf32>
    %28 = vector.extract_strided_slice %22 {offsets = [0, 0, 0], sizes = [2, 8, 8], strides = [1, 1, 1]} : vector<2x8x32xf32> to vector<2x8x8xf32>
    %29 = vector.extract_strided_slice %23 {offsets = [0, 0, 0], sizes = [2, 8, 8], strides = [1, 1, 1]} : vector<2x8x32xf32> to vector<2x8x8xf32>
    "tpu.trace_start"() <{level = 10 : i32, message = "bqd,bkd->bqk"}> : () -> ()
    %cst_11 = arith.constant dense<0.000000e+00> : vector<2x8x8xf32>
    %30 = tpu.matmul %28, %29, %cst_11 {dimension_numbers = #tpu.dot_dimension_numbers<[2], [2], [1], [1], [0, 0, 0, 1, 1, 1], [0], [0]>} : vector<2x8x8xf32>, vector<2x8x8xf32>, vector<2x8x8xf32> -> vector<2x8x8xf32>
    "tpu.trace_stop"() : () -> ()
    %31 = arith.addf %30, %27 : vector<2x8x8xf32>
    %cst_12 = arith.constant dense<0xFF800000> : vector<2x8xf32>
    %32 = vector.multi_reduction <maximumf>, %31, %cst_12 [2] : vector<2x8x8xf32> to vector<2x8xf32>
    %33 = vector.shape_cast %32 : vector<2x8xf32> to vector<2x8x1xf32>
    %34 = vector.broadcast %33 : vector<2x8x1xf32> to vector<2x8x8xf32>
    %35 = arith.subf %31, %34 : vector<2x8x8xf32>
    %36 = math.exp %35 : vector<2x8x8xf32>
    %cst_13 = arith.constant dense<0.000000e+00> : vector<2x8xf32>
    %37 = vector.multi_reduction <add>, %36, %cst_13 [2] : vector<2x8x8xf32> to vector<2x8xf32>
    %38 = vector.shape_cast %37 : vector<2x8xf32> to vector<2x8x1xf32>
    %39 = vector.broadcast %38 : vector<2x8x1xf32> to vector<2x8x8xf32>
    %40 = arith.divf %36, %39 : vector<2x8x8xf32>
    %41 = vector.extract_strided_slice %24 {offsets = [0, 0, 0], sizes = [2, 8, 8], strides = [1, 1, 1]} : vector<2x8x32xf32> to vector<2x8x8xf32>
    "tpu.trace_start"() <{level = 10 : i32, message = "bqk,bkd->bqd"}> : () -> ()
    %cst_14 = arith.constant dense<0.000000e+00> : vector<2x8x8xf32>
    %42 = tpu.matmul %40, %41, %cst_14 {dimension_numbers = #tpu.dot_dimension_numbers<[2], [1], [1], [2], [0, 0, 0, 1, 1, 2], [0], [0]>} : vector<2x8x8xf32>, vector<2x8x8xf32>, vector<2x8x8xf32> -> vector<2x8x8xf32>
    "tpu.trace_stop"() : () -> ()
    %43 = vector.extract_strided_slice %22 {offsets = [0, 0, 8], sizes = [2, 8, 8], strides = [1, 1, 1]} : vector<2x8x32xf32> to vector<2x8x8xf32>
    %44 = vector.extract_strided_slice %23 {offsets = [0, 0, 8], sizes = [2, 8, 8], strides = [1, 1, 1]} : vector<2x8x32xf32> to vector<2x8x8xf32>
    "tpu.trace_start"() <{level = 10 : i32, message = "bqd,bkd->bqk"}> : () -> ()
    %cst_15 = arith.constant dense<0.000000e+00> : vector<2x8x8xf32>
    %45 = tpu.matmul %43, %44, %cst_15 {dimension_numbers = #tpu.dot_dimension_numbers<[2], [2], [1], [1], [0, 0, 0, 1, 1, 1], [0], [0]>} : vector<2x8x8xf32>, vector<2x8x8xf32>, vector<2x8x8xf32> -> vector<2x8x8xf32>
    "tpu.trace_stop"() : () -> ()
    %46 = arith.addf %45, %27 : vector<2x8x8xf32>
    %cst_16 = arith.constant dense<0xFF800000> : vector<2x8xf32>
    %47 = vector.multi_reduction <maximumf>, %46, %cst_16 [2] : vector<2x8x8xf32> to vector<2x8xf32>
    %48 = vector.shape_cast %47 : vector<2x8xf32> to vector<2x8x1xf32>
    %49 = vector.broadcast %48 : vector<2x8x1xf32> to vector<2x8x8xf32>
    %50 = arith.subf %46, %49 : vector<2x8x8xf32>
    %51 = math.exp %50 : vector<2x8x8xf32>
    %cst_17 = arith.constant dense<0.000000e+00> : vector<2x8xf32>
    %52 = vector.multi_reduction <add>, %51, %cst_17 [2] : vector<2x8x8xf32> to vector<2x8xf32>
    %53 = vector.shape_cast %52 : vector<2x8xf32> to vector<2x8x1xf32>
    %54 = vector.broadcast %53 : vector<2x8x1xf32> to vector<2x8x8xf32>
    %55 = arith.divf %51, %54 : vector<2x8x8xf32>
    %56 = vector.extract_strided_slice %24 {offsets = [0, 0, 8], sizes = [2, 8, 8], strides = [1, 1, 1]} : vector<2x8x32xf32> to vector<2x8x8xf32>
    "tpu.trace_start"() <{level = 10 : i32, message = "bqk,bkd->bqd"}> : () -> ()
    %cst_18 = arith.constant dense<0.000000e+00> : vector<2x8x8xf32>
    %57 = tpu.matmul %55, %56, %cst_18 {dimension_numbers = #tpu.dot_dimension_numbers<[2], [1], [1], [2], [0, 0, 0, 1, 1, 2], [0], [0]>} : vector<2x8x8xf32>, vector<2x8x8xf32>, vector<2x8x8xf32> -> vector<2x8x8xf32>
    "tpu.trace_stop"() : () -> ()
    %58 = vector.extract_strided_slice %22 {offsets = [0, 0, 16], sizes = [2, 8, 8], strides = [1, 1, 1]} : vector<2x8x32xf32> to vector<2x8x8xf32>
    %59 = vector.extract_strided_slice %23 {offsets = [0, 0, 16], sizes = [2, 8, 8], strides = [1, 1, 1]} : vector<2x8x32xf32> to vector<2x8x8xf32>
    "tpu.trace_start"() <{level = 10 : i32, message = "bqd,bkd->bqk"}> : () -> ()
    %cst_19 = arith.constant dense<0.000000e+00> : vector<2x8x8xf32>
    %60 = tpu.matmul %58, %59, %cst_19 {dimension_numbers = #tpu.dot_dimension_numbers<[2], [2], [1], [1], [0, 0, 0, 1, 1, 1], [0], [0]>} : vector<2x8x8xf32>, vector<2x8x8xf32>, vector<2x8x8xf32> -> vector<2x8x8xf32>
    "tpu.trace_stop"() : () -> ()
    %61 = arith.addf %60, %27 : vector<2x8x8xf32>
    %cst_20 = arith.constant dense<0xFF800000> : vector<2x8xf32>
    %62 = vector.multi_reduction <maximumf>, %61, %cst_20 [2] : vector<2x8x8xf32> to vector<2x8xf32>
    %63 = vector.shape_cast %62 : vector<2x8xf32> to vector<2x8x1xf32>
    %64 = vector.broadcast %63 : vector<2x8x1xf32> to vector<2x8x8xf32>
    %65 = arith.subf %61, %64 : vector<2x8x8xf32>
    %66 = math.exp %65 : vector<2x8x8xf32>
    %cst_21 = arith.constant dense<0.000000e+00> : vector<2x8xf32>
    %67 = vector.multi_reduction <add>, %66, %cst_21 [2] : vector<2x8x8xf32> to vector<2x8xf32>
    %68 = vector.shape_cast %67 : vector<2x8xf32> to vector<2x8x1xf32>
    %69 = vector.broadcast %68 : vector<2x8x1xf32> to vector<2x8x8xf32>
    %70 = arith.divf %66, %69 : vector<2x8x8xf32>
    %71 = vector.extract_strided_slice %24 {offsets = [0, 0, 16], sizes = [2, 8, 8], strides = [1, 1, 1]} : vector<2x8x32xf32> to vector<2x8x8xf32>
    "tpu.trace_start"() <{level = 10 : i32, message = "bqk,bkd->bqd"}> : () -> ()
    %cst_22 = arith.constant dense<0.000000e+00> : vector<2x8x8xf32>
    %72 = tpu.matmul %70, %71, %cst_22 {dimension_numbers = #tpu.dot_dimension_numbers<[2], [1], [1], [2], [0, 0, 0, 1, 1, 2], [0], [0]>} : vector<2x8x8xf32>, vector<2x8x8xf32>, vector<2x8x8xf32> -> vector<2x8x8xf32>
    "tpu.trace_stop"() : () -> ()
    %73 = vector.extract_strided_slice %22 {offsets = [0, 0, 24], sizes = [2, 8, 8], strides = [1, 1, 1]} : vector<2x8x32xf32> to vector<2x8x8xf32>
    %74 = vector.extract_strided_slice %23 {offsets = [0, 0, 24], sizes = [2, 8, 8], strides = [1, 1, 1]} : vector<2x8x32xf32> to vector<2x8x8xf32>
    "tpu.trace_start"() <{level = 10 : i32, message = "bqd,bkd->bqk"}> : () -> ()
    %cst_23 = arith.constant dense<0.000000e+00> : vector<2x8x8xf32>
    %75 = tpu.matmul %73, %74, %cst_23 {dimension_numbers = #tpu.dot_dimension_numbers<[2], [2], [1], [1], [0, 0, 0, 1, 1, 1], [0], [0]>} : vector<2x8x8xf32>, vector<2x8x8xf32>, vector<2x8x8xf32> -> vector<2x8x8xf32>
    "tpu.trace_stop"() : () -> ()
    %76 = arith.addf %75, %27 : vector<2x8x8xf32>
    %cst_24 = arith.constant dense<0xFF800000> : vector<2x8xf32>
    %77 = vector.multi_reduction <maximumf>, %76, %cst_24 [2] : vector<2x8x8xf32> to vector<2x8xf32>
    %78 = vector.shape_cast %77 : vector<2x8xf32> to vector<2x8x1xf32>
    %79 = vector.broadcast %78 : vector<2x8x1xf32> to vector<2x8x8xf32>
    %80 = arith.subf %76, %79 : vector<2x8x8xf32>
    %81 = math.exp %80 : vector<2x8x8xf32>
    %cst_25 = arith.constant dense<0.000000e+00> : vector<2x8xf32>
    %82 = vector.multi_reduction <add>, %81, %cst_25 [2] : vector<2x8x8xf32> to vector<2x8xf32>
    %83 = vector.shape_cast %82 : vector<2x8xf32> to vector<2x8x1xf32>
    %84 = vector.broadcast %83 : vector<2x8x1xf32> to vector<2x8x8xf32>
    %85 = arith.divf %81, %84 : vector<2x8x8xf32>
    %86 = vector.extract_strided_slice %24 {offsets = [0, 0, 24], sizes = [2, 8, 8], strides = [1, 1, 1]} : vector<2x8x32xf32> to vector<2x8x8xf32>
    "tpu.trace_start"() <{level = 10 : i32, message = "bqk,bkd->bqd"}> : () -> ()
    %cst_26 = arith.constant dense<0.000000e+00> : vector<2x8x8xf32>
    %87 = tpu.matmul %85, %86, %cst_26 {dimension_numbers = #tpu.dot_dimension_numbers<[2], [1], [1], [2], [0, 0, 0, 1, 1, 2], [0], [0]>} : vector<2x8x8xf32>, vector<2x8x8xf32>, vector<2x8x8xf32> -> vector<2x8x8xf32>
    "tpu.trace_stop"() : () -> ()
    %88 = tpu.concatenate %42, %57, %72, %87 in 2 : vector<2x8x8xf32>, vector<2x8x8xf32>, vector<2x8x8xf32>, vector<2x8x8xf32> -> vector<2x8x32xf32>
    %89 = vector.shape_cast %88 : vector<2x8x32xf32> to vector<16x32xf32>
    %90 = vector.extract_strided_slice %5 {offsets = [0, 96], sizes = [32, 32], strides = [1, 1]} : vector<32x256xf32> to vector<32x32xf32>
    %cst_27 = arith.constant dense<0.000000e+00> : vector<16x32xf32>
    %91 = tpu.matmul %89, %90, %cst_27 {dimension_numbers = #tpu.dot_dimension_numbers<[1], [0], [0], [1], [0, 0, 1, 1], [], []>} : vector<16x32xf32>, vector<32x32xf32>, vector<16x32xf32> -> vector<16x32xf32>
    %92 = vector.extract_strided_slice %7 {offsets = [3, 0], sizes = [1, 32], strides = [1, 1]} : vector<10x128xf32> to vector<1x32xf32>
    %93 = vector.broadcast %92 : vector<1x32xf32> to vector<16x32xf32>
    %94 = arith.addf %91, %93 : vector<16x32xf32>
    %95 = arith.addf %94, %3 : vector<16x32xf32>
    %96 = vector.extract_strided_slice %7 {offsets = [4, 0], sizes = [1, 32], strides = [1, 1]} : vector<10x128xf32> to vector<1x32xf32>
    %97 = vector.extract_strided_slice %7 {offsets = [5, 0], sizes = [1, 32], strides = [1, 1]} : vector<10x128xf32> to vector<1x32xf32>
    %cst_28 = arith.constant dense<0.000000e+00> : vector<16xf32>
    %98 = vector.multi_reduction <add>, %95, %cst_28 [1] : vector<16x32xf32> to vector<16xf32>
    %99 = vector.shape_cast %98 : vector<16xf32> to vector<16x1xf32>
    %cst_29 = arith.constant 3.200000e+01 : f32
    %100 = vector.broadcast %cst_29 : f32 to vector<16x1xf32>
    %101 = arith.divf %99, %100 : vector<16x1xf32>
    %102 = vector.broadcast %101 : vector<16x1xf32> to vector<16x32xf32>
    %103 = arith.subf %95, %102 : vector<16x32xf32>
    %104 = arith.mulf %103, %103 : vector<16x32xf32>
    %cst_30 = arith.constant dense<0.000000e+00> : vector<16xf32>
    %105 = vector.multi_reduction <add>, %104, %cst_30 [1] : vector<16x32xf32> to vector<16xf32>
    %106 = vector.shape_cast %105 : vector<16xf32> to vector<16x1xf32>
    %cst_31 = arith.constant 3.200000e+01 : f32
    %107 = vector.broadcast %cst_31 : f32 to vector<16x1xf32>
    %108 = arith.divf %106, %107 : vector<16x1xf32>
    %109 = vector.broadcast %101 : vector<16x1xf32> to vector<16x32xf32>
    %110 = arith.subf %95, %109 : vector<16x32xf32>
    %cst_32 = arith.constant 9.99999996E-13 : f32
    %111 = vector.broadcast %cst_32 : f32 to vector<16x1xf32>
    %112 = arith.addf %108, %111 : vector<16x1xf32>
    %113 = math.rsqrt %112 : vector<16x1xf32>
    %114 = vector.broadcast %113 : vector<16x1xf32> to vector<16x32xf32>
    %115 = arith.mulf %110, %114 : vector<16x32xf32>
    %116 = vector.broadcast %96 : vector<1x32xf32> to vector<16x32xf32>
    %117 = arith.mulf %115, %116 : vector<16x32xf32>
    %118 = vector.broadcast %97 : vector<1x32xf32> to vector<16x32xf32>
    %119 = arith.addf %117, %118 : vector<16x32xf32>
    %120 = vector.extract_strided_slice %5 {offsets = [0, 128], sizes = [32, 128], strides = [1, 1]} : vector<32x256xf32> to vector<32x128xf32>
    %cst_33 = arith.constant dense<0.000000e+00> : vector<16x128xf32>
    %121 = tpu.matmul %119, %120, %cst_33 {dimension_numbers = #tpu.dot_dimension_numbers<[1], [0], [0], [1], [0, 0, 1, 1], [], []>} : vector<16x32xf32>, vector<32x128xf32>, vector<16x128xf32> -> vector<16x128xf32>
    %122 = vector.extract_strided_slice %7 {offsets = [9, 0], sizes = [1, 128], strides = [1, 1]} : vector<10x128xf32> to vector<1x128xf32>
    %123 = vector.broadcast %122 : vector<1x128xf32> to vector<16x128xf32>
    %124 = arith.addf %121, %123 : vector<16x128xf32>
    %cst_34 = arith.constant 5.000000e-01 : f32
    %125 = vector.broadcast %cst_34 : f32 to vector<16x128xf32>
    %126 = arith.mulf %125, %124 : vector<16x128xf32>
    %cst_35 = arith.constant 0.707106769 : f32
    %127 = vector.broadcast %cst_35 : f32 to vector<16x128xf32>
    %128 = arith.mulf %124, %127 : vector<16x128xf32>
    %129 = math.absf %128 : vector<16x128xf32>
    %cst_36 = arith.constant 0.327591091 : f32
    %130 = vector.broadcast %cst_36 : f32 to vector<16x128xf32>
    %131 = arith.mulf %130, %129 : vector<16x128xf32>
    %cst_37 = arith.constant 1.000000e+00 : f32
    %132 = vector.broadcast %cst_37 : f32 to vector<16x128xf32>
    %133 = arith.addf %132, %131 : vector<16x128xf32>
    %cst_38 = arith.constant 1.000000e+00 : f32
    %134 = vector.broadcast %cst_38 : f32 to vector<16x128xf32>
    %135 = arith.divf %134, %133 : vector<16x128xf32>
    %cst_39 = arith.constant 1.06140542 : f32
    %136 = vector.broadcast %cst_39 : f32 to vector<16x128xf32>
    %137 = arith.mulf %136, %135 : vector<16x128xf32>
    %cst_40 = arith.constant -1.45315206 : f32
    %138 = vector.broadcast %cst_40 : f32 to vector<16x128xf32>
    %139 = arith.addf %137, %138 : vector<16x128xf32>
    %140 = arith.mulf %139, %135 : vector<16x128xf32>
    %cst_41 = arith.constant 1.42141378 : f32
    %141 = vector.broadcast %cst_41 : f32 to vector<16x128xf32>
    %142 = arith.addf %140, %141 : vector<16x128xf32>
    %143 = arith.mulf %142, %135 : vector<16x128xf32>
    %cst_42 = arith.constant -0.284496725 : f32
    %144 = vector.broadcast %cst_42 : f32 to vector<16x128xf32>
    %145 = arith.addf %143, %144 : vector<16x128xf32>
    %146 = arith.mulf %145, %135 : vector<16x128xf32>
    %cst_43 = arith.constant 0.254829586 : f32
    %147 = vector.broadcast %cst_43 : f32 to vector<16x128xf32>
    %148 = arith.addf %146, %147 : vector<16x128xf32>
    %149 = arith.mulf %148, %135 : vector<16x128xf32>
    %cst_44 = arith.constant 0.000000e+00 : f32
    %150 = vector.broadcast %cst_44 : f32 to vector<16x128xf32>
    %151 = arith.subf %150, %129 : vector<16x128xf32>
    %152 = arith.mulf %151, %129 : vector<16x128xf32>
    %153 = math.exp %152 : vector<16x128xf32>
    %154 = arith.mulf %149, %153 : vector<16x128xf32>
    %cst_45 = arith.constant 1.000000e+00 : f32
    %155 = vector.broadcast %cst_45 : f32 to vector<16x128xf32>
    %156 = arith.subf %155, %154 : vector<16x128xf32>
    %cst_46 = arith.constant 0.000000e+00 : f32
    %157 = vector.broadcast %cst_46 : f32 to vector<16x128xf32>
    %158 = arith.cmpf oge, %128, %157 : vector<16x128xf32>
    %cst_47 = arith.constant 0.000000e+00 : f32
    %159 = vector.broadcast %cst_47 : f32 to vector<16x128xf32>
    %160 = arith.subf %159, %156 : vector<16x128xf32>
    %161 = arith.select %158, %156, %160 : vector<16x128xi1>, vector<16x128xf32>
    %cst_48 = arith.constant 1.000000e+00 : f32
    %162 = vector.broadcast %cst_48 : f32 to vector<16x128xf32>
    %163 = arith.addf %162, %161 : vector<16x128xf32>
    %164 = arith.mulf %126, %163 : vector<16x128xf32>
    %c0_49 = arith.constant 0 : index
    %c0_50 = arith.constant 0 : index
    %c0_51 = arith.constant 0 : index
    %165 = vector.load %arg4[%c0_49, %c0_50, %c0_51] : memref<1x128x32xf32, #tpu.memory_space<vmem>>, vector<1x128x32xf32>
    %166 = vector.shape_cast %165 : vector<1x128x32xf32> to vector<128x32xf32>
    %cst_52 = arith.constant dense<0.000000e+00> : vector<16x32xf32>
    %167 = tpu.matmul %164, %166, %cst_52 {dimension_numbers = #tpu.dot_dimension_numbers<[1], [0], [0], [1], [0, 0, 1, 1], [], []>} : vector<16x128xf32>, vector<128x32xf32>, vector<16x32xf32> -> vector<16x32xf32>
    %168 = vector.extract_strided_slice %7 {offsets = [6, 0], sizes = [1, 32], strides = [1, 1]} : vector<10x128xf32> to vector<1x32xf32>
    %169 = vector.broadcast %168 : vector<1x32xf32> to vector<16x32xf32>
    %170 = arith.addf %167, %169 : vector<16x32xf32>
    %171 = arith.addf %170, %119 : vector<16x32xf32>
    %172 = vector.extract_strided_slice %7 {offsets = [7, 0], sizes = [1, 32], strides = [1, 1]} : vector<10x128xf32> to vector<1x32xf32>
    %173 = vector.extract_strided_slice %7 {offsets = [8, 0], sizes = [1, 32], strides = [1, 1]} : vector<10x128xf32> to vector<1x32xf32>
    %cst_53 = arith.constant dense<0.000000e+00> : vector<16xf32>
    %174 = vector.multi_reduction <add>, %171, %cst_53 [1] : vector<16x32xf32> to vector<16xf32>
    %175 = vector.shape_cast %174 : vector<16xf32> to vector<16x1xf32>
    %cst_54 = arith.constant 3.200000e+01 : f32
    %176 = vector.broadcast %cst_54 : f32 to vector<16x1xf32>
    %177 = arith.divf %175, %176 : vector<16x1xf32>
    %178 = vector.broadcast %177 : vector<16x1xf32> to vector<16x32xf32>
    %179 = arith.subf %171, %178 : vector<16x32xf32>
    %180 = arith.mulf %179, %179 : vector<16x32xf32>
    %cst_55 = arith.constant dense<0.000000e+00> : vector<16xf32>
    %181 = vector.multi_reduction <add>, %180, %cst_55 [1] : vector<16x32xf32> to vector<16xf32>
    %182 = vector.shape_cast %181 : vector<16xf32> to vector<16x1xf32>
    %cst_56 = arith.constant 3.200000e+01 : f32
    %183 = vector.broadcast %cst_56 : f32 to vector<16x1xf32>
    %184 = arith.divf %182, %183 : vector<16x1xf32>
    %185 = vector.broadcast %177 : vector<16x1xf32> to vector<16x32xf32>
    %186 = arith.subf %171, %185 : vector<16x32xf32>
    %cst_57 = arith.constant 9.99999996E-13 : f32
    %187 = vector.broadcast %cst_57 : f32 to vector<16x1xf32>
    %188 = arith.addf %184, %187 : vector<16x1xf32>
    %189 = math.rsqrt %188 : vector<16x1xf32>
    %190 = vector.broadcast %189 : vector<16x1xf32> to vector<16x32xf32>
    %191 = arith.mulf %186, %190 : vector<16x32xf32>
    %192 = vector.broadcast %172 : vector<1x32xf32> to vector<16x32xf32>
    %193 = arith.mulf %191, %192 : vector<16x32xf32>
    %194 = vector.broadcast %173 : vector<1x32xf32> to vector<16x32xf32>
    %195 = arith.addf %193, %194 : vector<16x32xf32>
    %c0_58 = arith.constant 0 : index
    %c0_59 = arith.constant 0 : index
    %196 = vector.load %arg7[%c0_58, %c0_59] : memref<16x32xf32, #tpu.memory_space<vmem>>, vector<16x32xf32>
    tpu.vector_store %arg7[%c0_58, %c0_59], %195 {strides = array<i32>} : memref<16x32xf32, #tpu.memory_space<vmem>>, vector<16x32xf32>,
    %c0_60 = arith.constant 0 : index
    %c0_61 = arith.constant 0 : index
    %197 = vector.load %arg6[%c0_60, %c0_61] : memref<16x32xf32, #tpu.memory_space<vmem>>, vector<16x32xf32>
    tpu.vector_store %arg6[%c0_60, %c0_61], %195 {strides = array<i32>} : memref<16x32xf32, #tpu.memory_space<vmem>>, vector<16x32xf32>,
    return
  }
  func.func @transform_0(%arg0: i32) -> (i32, i32) {
    %c0_i32 = arith.constant 0 : i32
    %c0_i32_0 = arith.constant 0 : i32
    %c0_i32_1 = arith.constant 0 : i32
    return %c0_i32, %c0_i32_0 : i32, i32
  }
  func.func @transform_1(%arg0: i32) -> (i32, i32, i32) {
    %c0_i32 = arith.constant 0 : i32
    %c0_i32_0 = arith.constant 0 : i32
    %c0_i32_1 = arith.constant 0 : i32
    %c0_i32_2 = arith.constant 0 : i32
    return %c0_i32, %c0_i32_0, %c0_i32_1 : i32, i32, i32
  }
  func.func @transform_2(%arg0: i32) -> (i32, i32, i32) {
    %c0_i32 = arith.constant 0 : i32
    %c0_i32_0 = arith.constant 0 : i32
    %c0_i32_1 = arith.constant 0 : i32
    return %arg0, %c0_i32, %c0_i32_0 : i32, i32, i32
  }
  func.func @transform_3(%arg0: i32) -> (i32, i32, i32) {
    %c0_i32 = arith.constant 0 : i32
    %c0_i32_0 = arith.constant 0 : i32
    %c0_i32_1 = arith.constant 0 : i32
    return %arg0, %c0_i32, %c0_i32_0 : i32, i32, i32
  }
  func.func @transform_4(%arg0: i32) -> (i32, i32, i32) {
    %c0_i32 = arith.constant 0 : i32
    %c0_i32_0 = arith.constant 0 : i32
    %c0_i32_1 = arith.constant 0 : i32
    return %arg0, %c0_i32, %c0_i32_0 : i32, i32, i32
  }
  func.func @transform_5(%arg0: i32) -> (i32, i32) {
    %c0_i32 = arith.constant 0 : i32
    %c0_i32_0 = arith.constant 0 : i32
    %c0_i32_1 = arith.constant 0 : i32
    return %c0_i32, %c0_i32_0 : i32, i32
  }
}

</mosaic_0001>

<bundles_post_ra>
// kernel: tpu_custom_call.1
= control target key start
LH: loop header
LB: loop body
LE: loop exit
PB: predicated region body
PF: predicated region fallthrough
CT: control target
= control target key end

     0   :  { %10 = vsyncpa [#allocation4], 0  ;;  %s1602_s18 = smov 0   ;;  %s1900_s0 = inlined_call_operand.vmem [shape: f32[16,32], index: 0, kind: input, shape index: {}]   ;;  %s1901_s1 = inlined_call_operand.vmem [shape: f32[2,1,8], index: 1, kind: input, shape index: {}]   ;;  %s1902_s2 = inlined_call_operand.vmem [shape: f32[2,32,256], index: 2, kind: input, shape index: {}]   ;;  %s1903_s3 = inlined_call_operand.vmem [shape: f32[2,128,32], index: 3, kind: input, shape index: {}]   ;;  %s1904_s4 = inlined_call_operand.vmem [shape: f32[2,10,128], index: 4, kind: input, shape index: {}]   ;;  %s1905_s5 = inlined_call_operand.hbm [shape: f32[16,32], index: 5, kind: output, shape index: {}]  }
   0x1 LB: > { %s1608_s19 = sadd.s32 4294967295, %s1552_s18   ;;  %p1374_p0 = scmp.ge.s32.totalorder %s1552_s18, 1  ;;  %s1552_s18 = sphi %s1602_s18, %s16_s18  }
   0x2   : > { %p203_p1 = scmp.lt.s32.totalorder %s1552_s18, 3 }
   0x4   : > { %p204_p2 = pnand %p1374_p0, %p203_p1 }
   0x5   : > { %p236_p3 = scmp.lt.s32.totalorder (!%p204_p2), %s1608_s19, 1  ;;  %p1381_p4 = scmp.ne.s32.totalorder (!%p204_p2), %s1608_s19, 0 }
   0x6   : > { %207 = sbr.rel (%p204_p2) target bundleno = 2881 (0xb41), region = 40 }
   0xb   : > { %s237_s20 = scalar_select %p236_p3, %s1608_s19, 1 }
   0xc   : > { %254 = sbr.rel (%p1381_p4) target bundleno = 20 (0x14), region = 44 }
   0xd   : > { %s1416_s21 = sshll.u32 %s237_s20, 6  ;;  %s1417_s22 = sshll.u32 %s237_s20, 7 }
   0xe   : > { %s1617_s25 = scalar_lea.vmem %s1902_s2, %s1416_s21  ;;  %s1622_s28 = scalar_lea.vmem %s1903_s3, %s1417_s22 }
   0xf   : > { %s1418_s29 = sshll.u32 %s237_s20, 4 }
  0x10   : > { %s1627_s7 = scalar_lea.vmem %s1904_s4, %s1418_s29 }
  0x11   : > { %v255_v0 = vld [vmem:[%s1900_s0] sm:$0xff]  ;;  %vm257_vm0 = vcmask 261120   ;;  %v256_v1 = vld [vmem:[%s1900_s0 + $0x8] sm:$0xff] }
  0x12   : > { %258 = vst.msk [vmem:[#allocation2] sm:$0xff] %vm257_vm0, %v255_v0 }
  0x13   : > { %259 = vst.msk [vmem:[#allocation2 + $0x8] sm:$0xff] %vm257_vm0, %v256_v1 }
  0x14 PF: > { %v1637_v2 = vld [vmem:[%s1617_s25 + $0x30] sm:$0xff]  ;;  %v1640_v3 = vld [vmem:[%s1617_s25 + $0x20] sm:$0xff]  ;;  %vm272_vm1 = vcmask 261120   ;;  %s1554_s12 = smov 32   ;;  %s1555_s13 = smov 96   ;;  %vm330_vm2 = vcmask 64512  }
  0x15   : > { %291 = vmatpush.msra.mxu0 %v1637_v2  ;;  %v1451_v4 = vpack.i.bf16 %v1640_v3, %v1637_v2  ;;  %v1646_v5 = vld [vmem:[%s1617_s25 + $0x10] sm:$0xff]  ;;  %v1649_v6 = vld [vmem:[%s1617_s25] sm:$0xff]  ;;  %s1556_s20 = smov 64   ;;  %s1557_s21 = smov 120  }
  0x16   : > { %v1456_v7 = vpack.i.bf16 %v1649_v6, %v1646_v5  ;;  %v1654_v8 = vld [vmem:[%s1627_s7] sm:$0xff]  ;;  %s1558_s22 = smov 88   ;;  %s1559_s23 = smov 56  }
  0x17   : > { %292 = vmatpush.msra.mxu0 %v1640_v3  ;;  %v305_v9 = vperm.slane %v1654_v8, 1  ;;  %v302_v17 = vperm.slane %v1654_v8, 0  ;;  %v1683_v22 = vld [vmem:[%s1901_s1] ss:$0 sm:$0xff]  ;;  %v1690_v26 = vld [vmem:[%s1901_s1 + $0x1] ss:$0 sm:$0xff] }
  0x18   : > { %v312_v30 = vperm.slane %v1654_v8, 2  ;;  %s1560_s24 = smov 112   ;;  %s1561_s26 = smov 104  }
  0x19   : > { %293 = vmatpush.msra.mxu0 %v1646_v5  ;;  %v1659_v10 = vld [vmem:[#allocation2] sm:$0xff]  ;;  %307 = vrot.lane.b32.xlu0 %v305_v9, %s1554_s12  ;;  %s1562_s27 = smov 80   ;;  %s1563_s29 = smov 72  }
  0x1a   : > { %v1665_v11 = vld [vmem:[#allocation2 + $0x8] sm:$0xff]  ;;  %s1564_s30 = smov 48   ;;  %s1565_s6 = smov 40  }
  0x1b   : > { %294 = vmatpush.msra.mxu0 %v1649_v6  ;;  %s1566_s8 = smov 8   ;;  %s1567_s9 = smov 16  }
  0x1c   : > { %1382 = vmatmul.msk.f32.vlgmr.msra.gmra.mxu0 %vm272_vm1, %v1659_v10  ;;  %s1568_s10 = smov 24   ;;  %p1423_p5 = scmp.eq.s32.totalorder %s1608_s19, 1 }
  0x24   : > { %1383 = vmatmul.msk.f32.gmra.mxu0 %vm272_vm1, %v1665_v11 }
  0x8b   : > { %v308_v12 = vpop.permute.xlu0 %307 }
  0x99   : > { %v296_v13 = vpop.f32.mrf.mxu0 }
  0x9a   : > { %v1669_v14 = vadd.f32 %v308_v12, %v296_v13  ;;  %v303_v19 = vadd.f32 %v302_v17, %v296_v13 }
  0x9c   : > { %328 = vrot.lane.b32.xlu0 %v1669_v14, %s1555_s13 }
  0xa1   : > { %v299_v15 = vpop.f32.mrf.mxu0 }
  0xa2   : > { %v311_v16 = vadd.f32 %v308_v12, %v299_v15  ;;  %v1676_v21 = vadd.f32 %v302_v17, %v299_v15 }
  0xa4   : > { %357 = vrot.lane.b32.xlu1 %v311_v16, %s1555_s13  ;;  %s1571_s13 = smov 128  }
 0x10e   : > { %v329_v18 = vpop.permute.xlu0 %328 }
 0x10f   : > { %1384 = vmatpush.xpose.msk.msra.mxu1 %vm330_vm2, %v329_v18 }
 0x112   : > { %1385 = vmatmul.msk.f32.vlgmr.msra.gmra.mxu1 %vm330_vm2, %v303_v19 }
 0x116   : > { %v358_v20 = vpop.permute.xlu1 %357 }
 0x117   : > { %1386 = vmatpush.xpose.msk.msra.mxu2 %vm330_vm2, %v358_v20 }
 0x11a   : > { %1387 = vmatmul.msk.f32.vlgmr.msra.gmra.mxu2 %vm330_vm2, %v1676_v21 }
 0x18f   : > { %v353_v23 = vpop.f32.mrf.mxu1 }
 0x190   : > { %v354_v24 = vadd.f32 %v1683_v22, %v353_v23 }
 0x192   : > { %v384_v25 = vsel %vm330_vm2, %v354_v24, -inf }
 0x193   : > { %385 = vmax.xlane.f32.xlu1 %v384_v25 }
 0x19d   : > { %v381_v27 = vpop.f32.mrf.mxu2 }
 0x19e   : > { %v382_v28 = vadd.f32 %v1690_v26, %v381_v27 }
 0x1a0   : > { %v387_v29 = vsel %vm330_vm2, %v382_v28, -inf }
 0x1a1   : > { %388 = vmax.xlane.f32.xlu2 %v387_v29 }
 0x1b9   : > { %314 = vrot.lane.b32.xlu2 %v312_v30, %s1556_s20 }
 0x206   : > { %v386_v31 = vpop.xlane.xlu1 %385 }
 0x207   : > { %v390_v32 = vsub.f32 %v354_v24, %v386_v31 }
 0x209   : > { %v392_v33 = vmul.f32 1.442695, %v390_v32 }
 0x20b   : > { %1463 = vpow2.f32 %v392_v33 }
 0x211   : > { %v1464_v34 = vpop.eup %1463 }
 0x212   : > { %v396_v35 = vsel %vm330_vm2, %v1464_v34, 0.0 }
 0x213   : > { %397 = vadd.xlane.f32.xlu0 %v396_v35 }
 0x214   : > { %v389_v36 = vpop.xlane.xlu2 %388 }
 0x215   : > { %v391_v37 = vsub.f32 %v382_v28, %v389_v36 }
 0x217   : > { %v394_v38 = vmul.f32 1.442695, %v391_v37 }
 0x219   : > { %1465 = vpow2.f32 %v394_v38 }
 0x21c   : > { %v315_v39 = vpop.permute.xlu2 %314 }
 0x21d   : > { %v1696_v40 = vadd.f32 %v315_v39, %v296_v13  ;;  %v1703_v43 = vadd.f32 %v315_v39, %v299_v15 }
 0x21f   : > { %v1698_v41 = vpop.eup %1465  ;;  %433 = vrot.lane.b32.xlu1 %v1696_v40, %s1556_s20 }
 0x220   : > { %v399_v42 = vsel %vm330_vm2, %v1698_v41, 0.0 }
 0x221   : > { %400 = vadd.xlane.f32.xlu2 %v399_v42 }
 0x227   : > { %460 = vrot.lane.b32.xlu0 %v1703_v43, %s1556_s20  ;;  %486 = vrot.lane.b32.xlu1 %v303_v19, %s1557_s21 }
 0x239   : > { %488 = vrot.lane.b32.xlu2 %v1669_v14, %s1558_s22 }
 0x241   : > { %516 = vrot.lane.b32.xlu2 %v311_v16, %s1558_s22 }
 0x249   : > { %514 = vrot.lane.b32.xlu2 %v1676_v21, %s1557_s21 }
 0x251   : > { %590 = vrot.lane.b32.xlu2 %v1696_v40, %s1559_s23 }
 0x259   : > { %642 = vrot.lane.b32.xlu2 %v303_v19, %s1560_s24 }
 0x261   : > { %798 = vrot.lane.b32.xlu2 %v303_v19, %s1561_s26 }
 0x269   : > { %672 = vrot.lane.b32.xlu2 %v311_v16, %s1562_s27 }
 0x271   : > { %828 = vrot.lane.b32.xlu2 %v311_v16, %s1563_s29 }
 0x286   : > { %v398_v44 = vpop.xlane.xlu0 %397 }
 0x287   : > { %1467 = vrcp.f32 %v398_v44  ;;  %v413_v48 = vand.u32 2147483648, %v398_v44  ;;  %v411_v51 = vand.u32 2147483647, %v398_v44  ;;  %vm407_vm4 = vweird.f32 %v398_v44 }
 0x289   : > { %v414_v54 = vor.u32 1.1754944e-38, %v413_v48  ;;  %vm412_vm6 = vcmp.eq.f32.partialorder %v411_v51, 8.507059e+37 }
 0x28d   : > { %v1468_v45 = vpop.eup %1467 }
 0x28e   : > { %v403_v46 = vmul.f32 %v1468_v45, %v398_v44  ;;  %vm408_vm3 = vweird.f32 %v1468_v45 }
 0x28f   : > { %vm409_vm5 = vmor %vm407_vm4, %vm408_vm3 }
 0x290   : > { %v404_v47 = vsub.f32 1.0, %v403_v46 }
 0x291   : > { %v434_v49 = vpop.permute.xlu1 %433 }
 0x292   : > { %v405_v50 = vmul.f32 %v1468_v45, %v404_v47  ;;  %454 = vmatpush.msrb.mxu1 %v434_v49 }
 0x294   : > { %v406_v52 = vadd.f32 %v1468_v45, %v405_v50  ;;  %v401_v53 = vpop.xlane.xlu2 %400 }
 0x295   : > { %1469 = vrcp.f32 %v401_v53  ;;  %v428_v63 = vand.u32 2147483648, %v401_v53  ;;  %v426_v1 = vand.u32 2147483647, %v401_v53  ;;  %vm422_vm8 = vweird.f32 %v401_v53 }
 0x296   : > { %v410_v55 = vsel %vm409_vm5, %v1468_v45, %v406_v52 }
 0x297   : > { %v415_v56 = vsel %vm412_vm6, %v414_v54, %v410_v55  ;;  %v429_v12 = vor.u32 1.1754944e-38, %v428_v63  ;;  %vm427_vm10 = vcmp.eq.f32.partialorder %v426_v1, 8.507059e+37 }
 0x298   : > { %v416_v57 = vmul.f32 %v1464_v34, %v415_v56 }
 0x299   : > { %v461_v58 = vpop.permute.xlu0 %460  ;;  %v487_v19 = vpop.permute.xlu1 %486 }
 0x29a   : > { %1388 = vmatmul.msk.f32.vlgmr.msrb.gmra.mxu1 %vm330_vm2, %v416_v57 }
 0x29b   : > { %v1470_v59 = vpop.eup %1469  ;;  %481 = vmatpush.msra.mxu1 %v461_v58 }
 0x29c   : > { %v418_v60 = vmul.f32 %v1470_v59, %v401_v53  ;;  %v489_v61 = vpop.permute.xlu2 %488  ;;  %vm423_vm7 = vweird.f32 %v1470_v59 }
 0x29d   : > { %1390 = vmatpush.xpose.msk.msrb.mxu1 %vm330_vm2, %v489_v61  ;;  %vm424_vm9 = vmor %vm422_vm8, %vm423_vm7 }
 0x29e   : > { %v419_v62 = vsub.f32 1.0, %v418_v60 }
 0x2a0   : > { %v420_v0 = vmul.f32 %v1470_v59, %v419_v62 }
 0x2a2   : > { %v421_v9 = vadd.f32 %v1470_v59, %v420_v0 }
 0x2a4   : > { %v425_v13 = vsel %vm424_vm9, %v1470_v59, %v421_v9  ;;  %v517_v15 = vpop.permute.xlu2 %516 }
 0x2a5   : > { %v430_v16 = vsel %vm427_vm10, %v429_v12, %v425_v13  ;;  %1392 = vmatpush.xpose.msk.msrb.mxu2 %vm330_vm2, %v517_v15 }
 0x2a6   : > { %v431_v17 = vmul.f32 %v1698_v41, %v430_v16 }
 0x2a8   : > { %1389 = vmatmul.msk.f32.vlgmr.msra.gmra.mxu1 %vm330_vm2, %v431_v17 }
 0x2ac   : > { %v515_v18 = vpop.permute.xlu2 %514 }
 0x2ad   : > { %1393 = vmatmul.msk.f32.vlgmr.msrb.gmra.mxu2 %vm330_vm2, %v515_v18 }
 0x2b0   : > { %1391 = vmatmul.msk.f32.vlgmr.msrb.gmra.mxu1 %vm330_vm2, %v487_v19 }
 0x2b4   : > { %v591_v20 = vpop.permute.xlu2 %590 }
 0x2b5   : > { %611 = vmatpush.msra.mxu2 %v591_v20 }
 0x2bc   : > { %v643_v23 = vpop.permute.xlu2 %642 }
 0x2c4   : > { %v799_v24 = vpop.permute.xlu2 %798 }
 0x2cc   : > { %v673_v25 = vpop.permute.xlu2 %672 }
 0x2cd   : > { %1398 = vmatpush.xpose.msk.msrb.mxu0 %vm330_vm2, %v673_v25 }
 0x2d4   : > { %v829_v27 = vpop.permute.xlu2 %828 }
 0x2d5   : > { %1404 = vmatpush.xpose.msk.msra.mxu0 %vm330_vm2, %v829_v27 }
 0x317   : > { %v1723_v28 = vpop.f32.mrf.mxu1 }
 0x325   : > { %v1725_v29 = vpop.f32.mrf.mxu1 }
 0x32d   : > { %v511_v30 = vpop.f32.mrf.mxu1 }
 0x32e   : > { %v512_v31 = vadd.f32 %v1683_v22, %v511_v30 }
 0x330   : > { %v539_v32 = vpop.f32.mrf.mxu2  ;;  %v542_v33 = vsel %vm330_vm2, %v512_v31, -inf }
 0x331   : > { %v540_v34 = vadd.f32 %v1690_v26, %v539_v32  ;;  %543 = vmax.xlane.f32.xlu0 %v542_v33 }
 0x333   : > { %v545_v35 = vsel %vm330_vm2, %v540_v34, -inf }
 0x334   : > { %546 = vmax.xlane.f32.xlu2 %v545_v35 }
 0x345   : > { %644 = vrot.lane.b32.xlu0 %v1669_v14, %s1562_s27 }
 0x34d   : > { %670 = vrot.lane.b32.xlu0 %v1676_v21, %s1560_s24 }
 0x355   : > { %826 = vrot.lane.b32.xlu0 %v1676_v21, %s1561_s26 }
 0x3a4   : > { %v544_v36 = vpop.xlane.xlu0 %543 }
 0x3a5   : > { %v548_v37 = vsub.f32 %v512_v31, %v544_v36 }
 0x3a7   : > { %v550_v38 = vmul.f32 1.442695, %v548_v37  ;;  %v547_v61 = vpop.xlane.xlu2 %546 }
 0x3a8   : > { %v549_v13 = vsub.f32 %v540_v34, %v547_v61 }
 0x3a9   : > { %1471 = vpow2.f32 %v550_v38 }
 0x3aa   : > { %v552_v18 = vmul.f32 1.442695, %v549_v13 }
 0x3af   : > { %v1472_v39 = vpop.eup %1471 }
 0x3b0   : > { %v554_v41 = vsel %vm330_vm2, %v1472_v39, 0.0 }
 0x3b1   : > { %555 = vadd.xlane.f32.xlu1 %v554_v41 }
 0x3b7   : > { %v645_v42 = vpop.permute.xlu0 %644 }
 0x3b8   : > { %1396 = vmatpush.xpose.msk.msrb.mxu2 %vm330_vm2, %v645_v42 }
 0x3bf   : > { %v671_v44 = vpop.permute.xlu0 %670 }
 0x3c0   : > { %1399 = vmatmul.msk.f32.vlgmr.msrb.gmra.mxu0 %vm330_vm2, %v671_v44 }
 0x3c7   : > { %v827_v45 = vpop.permute.xlu0 %826 }
 0x3c8   : > { %1405 = vmatmul.msk.f32.vlgmr.msra.gmra.mxu0 %vm330_vm2, %v827_v45 }
 0x3ca   : > { %800 = vrot.lane.b32.xlu1 %v1669_v14, %s1563_s29 }
 0x424   : > { %v556_v21 = vpop.xlane.xlu1 %555 }
 0x425   : > { %1473 = vrcp.f32 %v556_v21  ;;  %v571_v49 = vand.u32 2147483648, %v556_v21  ;;  %v569_v51 = vand.u32 2147483647, %v556_v21  ;;  %vm565_vm12 = vweird.f32 %v556_v21 }
 0x427   : > { %v572_v53 = vor.u32 1.1754944e-38, %v571_v49  ;;  %vm570_vm14 = vcmp.eq.f32.partialorder %v569_v51, 8.507059e+37 }
 0x42b   : > { %v1474_v46 = vpop.eup %1473 }
 0x42c   : > { %v561_v47 = vmul.f32 %v1474_v46, %v556_v21  ;;  %vm566_vm11 = vweird.f32 %v1474_v46 }
 0x42d   : > { %vm567_vm13 = vmor %vm565_vm12, %vm566_vm11 }
 0x42e   : > { %v562_v48 = vsub.f32 1.0, %v561_v47 }
 0x430   : > { %v563_v50 = vmul.f32 %v1474_v46, %v562_v48 }
 0x432   : > { %v564_v52 = vadd.f32 %v1474_v46, %v563_v50 }
 0x434   : > { %v568_v54 = vsel %vm567_vm13, %v1474_v46, %v564_v52 }
 0x435   : > { %v573_v55 = vsel %vm570_vm14, %v572_v53, %v568_v54 }
 0x436   : > { %v574_v56 = vmul.f32 %v1472_v39, %v573_v55 }
 0x438   : > { %1394 = vmatmul.msk.f32.vlgmr.msra.gmra.mxu2 %vm330_vm2, %v574_v56 }
 0x43c   : > { %v801_v14 = vpop.permute.xlu1 %800 }
 0x43d   : > { %v695_v57 = vpop.f32.mrf.mxu0  ;;  %1402 = vmatpush.xpose.msk.msra.mxu2 %vm330_vm2, %v801_v14 }
 0x43e   : > { %v696_v19 = vadd.f32 %v1690_v26, %v695_v57 }
 0x440   : > { %1397 = vmatmul.msk.f32.vlgmr.msrb.gmra.mxu2 %vm330_vm2, %v643_v23  ;;  %v701_v20 = vsel %vm330_vm2, %v696_v19, -inf }
 0x445   : > { %v851_v58 = vpop.f32.mrf.mxu0 }
 0x446   : > { %v852_v59 = vadd.f32 %v1690_v26, %v851_v58 }
 0x448   : > { %1403 = vmatmul.msk.f32.vlgmr.msra.gmra.mxu2 %vm330_vm2, %v799_v24  ;;  %v857_v60 = vsel %vm330_vm2, %v852_v59, -inf }
 0x449   : > { %858 = vmax.xlane.f32.xlu2 %v857_v60 }
 0x4bb   : > { %v613_v62 = vpop.f32.mrf.mxu2 }
 0x4bc   : > { %v859_v63 = vpop.xlane.xlu2 %858 }
 0x4bd   : > { %v861_v0 = vsub.f32 %v852_v59, %v859_v63 }
 0x4bf   : > { %v864_v1 = vmul.f32 1.442695, %v861_v0 }
 0x4c1   : > { %1475 = vpow2.f32 %v864_v1 }
 0x4c2   : > { %1477 = vpow2.f32 %v552_v18 }
 0x4c3   : > { %v667_v9 = vpop.f32.mrf.mxu2 }
 0x4c4   : > { %v668_v12 = vadd.f32 %v1683_v22, %v667_v9 }
 0x4c6   : > { %v698_v15 = vsel %vm330_vm2, %v668_v12, -inf }
 0x4c7   : > { %v1751_v16 = vpop.eup %1475  ;;  %699 = vmax.xlane.f32.xlu1 %v698_v15 }
 0x4c8   : > { %v869_v17 = vsel %vm330_vm2, %v1751_v16, 0.0  ;;  %v1757_v23 = vpop.eup %1477 }
 0x4c9   : > { %870 = vadd.xlane.f32.xlu2 %v869_v17  ;;  %v557_v24 = vsel %vm330_vm2, %v1757_v23, 0.0 }
 0x4cb   : > { %v823_v33 = vpop.f32.mrf.mxu2 }
 0x4cc   : > { %v824_v34 = vadd.f32 %v1683_v22, %v823_v33 }
 0x4ce   : > { %v854_v35 = vsel %vm330_vm2, %v824_v34, -inf }
 0x4cf   : > { %702 = vmax.xlane.f32.xlu1 %v701_v20 }
 0x4d7   : > { %558 = vadd.xlane.f32.xlu1 %v557_v24 }
 0x4f0   : > { %746 = vrot.lane.b32.xlu1 %v1696_v40, %s1564_s30 }
 0x4f8   : > { %772 = vrot.lane.b32.xlu1 %v1703_v43, %s1564_s30 }
 0x500   : > { %1452 = vrot.lane.b32.xlu1 %v1451_v4, %s1554_s12 }
 0x53a   : > { %v700_v26 = vpop.xlane.xlu1 %699 }
 0x53b   : > { %v704_v3 = vsub.f32 %v668_v12, %v700_v26 }
 0x53c   : > { %v871_v12 = vpop.xlane.xlu2 %870 }
 0x53d   : > { %v706_v4 = vmul.f32 1.442695, %v704_v3  ;;  %v898_v26 = vand.u32 2147483648, %v871_v12  ;;  %vm892_vm10 = vweird.f32 %v871_v12 }
 0x542   : > { %v703_v25 = vpop.xlane.xlu1 %702 }
 0x543   : > { %v705_v27 = vsub.f32 %v696_v19, %v703_v25 }
 0x545   : > { %v708_v30 = vmul.f32 1.442695, %v705_v27 }
 0x547   : > { %1479 = vpow2.f32 %v708_v30  ;;  %v899_v30 = vor.u32 1.1754944e-38, %v898_v26  ;;  %v1569_v26 = vmov 32.0  }
 0x548   : > { %1481 = vpow2.f32 %v706_v4 }
 0x54a   : > { %v559_v36 = vpop.xlane.xlu1 %558 }
 0x54b   : > { %1483 = vrcp.f32 %v559_v36  ;;  %vm580_vm0 = vweird.f32 %v559_v36  ;;  %v584_v52 = vand.u32 2147483647, %v559_v36 }
 0x54d   : > { %v1767_v31 = vpop.eup %1479  ;;  %vm585_vm4 = vcmp.eq.f32.partialorder %v584_v52, 8.507059e+37 }
 0x54e   : > { %v713_v32 = vsel %vm330_vm2, %v1767_v31, 0.0  ;;  %v1775_v37 = vpop.eup %1481 }
 0x54f   : > { %714 = vadd.xlane.f32.xlu0 %v713_v32  ;;  %v710_v38 = vsel %vm330_vm2, %v1775_v37, 0.0 }
 0x551   : > { %v1484_v39 = vpop.eup %1483 }
 0x552   : > { %v576_v41 = vmul.f32 %v1484_v39, %v559_v36  ;;  %vm581_vm15 = vweird.f32 %v1484_v39 }
 0x553   : > { %vm582_vm3 = vmor %vm580_vm0, %vm581_vm15 }
 0x554   : > { %v577_v44 = vsub.f32 1.0, %v576_v41 }
 0x556   : > { %v578_v47 = vmul.f32 %v1484_v39, %v577_v44 }
 0x557   : > { %855 = vmax.xlane.f32.xlu0 %v854_v35 }
 0x558   : > { %v579_v49 = vadd.f32 %v1484_v39, %v578_v47 }
 0x55a   : > { %v583_v54 = vsel %vm582_vm3, %v1484_v39, %v579_v49 }
 0x562   : > { %v747_v2 = vpop.permute.xlu1 %746 }
 0x563   : > { %767 = vmatpush.msra.mxu3 %v747_v2 }
 0x56b   : > { %616 = vrot.lane.b32.xlu0 %v1703_v43, %s1559_s23 }
 0x595   : > { %711 = vadd.xlane.f32.xlu0 %v710_v38 }
 0x5a9   : > { %928 = vrot.lane.b32.xlu0 %v1703_v43, %s1565_s6  ;;  %v586_v43 = vand.u32 2147483648, %v559_v36 }
 0x5ab   : > { %v587_v56 = vor.u32 1.1754944e-38, %v586_v43 }
 0x5ad   : > { %v588_v14 = vsel %vm585_vm4, %v587_v56, %v583_v54 }
 0x5ae   : > { %v589_v61 = vmul.f32 %v1757_v23, %v588_v14 }
 0x5b1   : > { %956 = vrot.lane.b32.xlu0 %v613_v62, %s1566_s8  ;;  %v773_v62 = vpop.permute.xlu1 %772 }
 0x5b9   : > { %v1453_v43 = vpop.permute.xlu1 %1452 }
 0x5ba   : > { %v1455_v52 = vunpack.i.h.bf16 %v1453_v43 }
 0x5c2   : > { %v715_v22 = vpop.xlane.xlu0 %714 }
 0x5c3   : > { %1485 = vrcp.f32 %v715_v22  ;;  %v742_v58 = vand.u32 2147483648, %v715_v22  ;;  %vm736_vm6 = vweird.f32 %v715_v22  ;;  %v740_v59 = vand.u32 2147483647, %v715_v22 }
 0x5c5   : > { %v743_v0 = vor.u32 1.1754944e-38, %v742_v58  ;;  %vm741_vm8 = vcmp.eq.f32.partialorder %v740_v59, 8.507059e+37 }
 0x5c9   : > { %v1486_v21 = vpop.eup %1485 }
 0x5ca   : > { %v856_v42 = vpop.xlane.xlu0 %855  ;;  %v732_v48 = vmul.f32 %v1486_v21, %v715_v22  ;;  %vm737_vm5 = vweird.f32 %v1486_v21 }
 0x5cb   : > { %v860_v45 = vsub.f32 %v824_v34, %v856_v42  ;;  %vm738_vm7 = vmor %vm736_vm6, %vm737_vm5 }
 0x5cc   : > { %v733_v50 = vsub.f32 1.0, %v732_v48 }
 0x5cd   : > { %v862_v46 = vmul.f32 1.442695, %v860_v45 }
 0x5ce   : > { %v734_v55 = vmul.f32 %v1486_v21, %v733_v50 }
 0x5cf   : > { %1487 = vpow2.f32 %v862_v46 }
 0x5d0   : > { %v735_v57 = vadd.f32 %v1486_v21, %v734_v55  ;;  %1489 = vrcp.f32 %v871_v12 }
 0x5d2   : > { %v739_v63 = vsel %vm738_vm7, %v1486_v21, %v735_v57  ;;  %vm980_vm7 = vcmask 130048  }
 0x5d3   : > { %v744_v1 = vsel %vm741_vm8, %v743_v0, %v739_v63  ;;  %vm983_vm8 = vcmask 195584  }
 0x5d4   : > { %v745_v9 = vmul.f32 %v1767_v31, %v744_v1 }
 0x5d5   : > { %v1782_v51 = vpop.eup %1487 }
 0x5d6   : > { %v866_v53 = vsel %vm330_vm2, %v1782_v51, 0.0  ;;  %v1490_v13 = vpop.eup %1489 }
 0x5d7   : > { %867 = vadd.xlane.f32.xlu2 %v866_v53  ;;  %v888_v15 = vmul.f32 %v1490_v13, %v871_v12  ;;  %vm893_vm9 = vweird.f32 %v1490_v13  ;;  %v1454_v53 = vunpack.i.l.bf16 %v1453_v43 }
 0x5d8   : > { %vm894_vm11 = vmor %vm892_vm10, %vm893_vm9 }
 0x5d9   : > { %v889_v18 = vsub.f32 1.0, %v888_v15  ;;  %1021 = vmatpush.msrb.mxu2 %v1454_v53  ;;  %v986_v15 = vperm.slane %v1654_v8, 3 }
 0x5db   : > { %v890_v19 = vmul.f32 %v1490_v13, %v889_v18  ;;  %1022 = vmatpush.msrb.mxu2 %v1455_v52  ;;  %v1085_v52 = vperm.slane %v1654_v8, 4 }
 0x5dd   : > { %v617_v60 = vpop.permute.xlu0 %616  ;;  %v891_v24 = vadd.f32 %v1490_v13, %v890_v19 }
 0x5de   : > { %637 = vmatpush.msra.mxu1 %v617_v60 }
 0x5df   : > { %1395 = vmatmul.msk.f32.vlgmr.msra.gmra.mxu1 %vm330_vm2, %v589_v61 }
 0x5e0   : > { %793 = vmatpush.msrb.mxu1 %v773_v62 }
 0x5e7   : > { %1401 = vmatmul.msk.f32.vlgmr.msrb.gmra.mxu1 %vm330_vm2, %v745_v9 }
 0x5ef   : > { %902 = vrot.lane.b32.xlu2 %v1696_v40, %s1565_s6  ;;  %v896_v40 = vand.u32 2147483647, %v871_v12 }
 0x5f1   : > { %vm897_vm14 = vcmp.eq.f32.partialorder %v896_v40, 8.507059e+37 }
 0x5f7   : > { %1457 = vrot.lane.b32.xlu2 %v1456_v7, %s1554_s12  ;;  %v895_v7 = vsel %vm894_vm11, %v1490_v13, %v891_v24  ;;  %s1304_s12 = sshll.u32 %s1905_s5, 4  ;;  %s1305_s12 = int_to_ptr.hbm [resolvable:$true] %s1304_s12 }
 0x5f8   : > { %v900_v33 = vsel %vm897_vm14, %v899_v30, %v895_v7 }
 0x5f9   : > { %v901_v3 = vmul.f32 %v1751_v16, %v900_v33 }
 0x608   : > { %v712_v17 = vpop.xlane.xlu0 %711 }
 0x609   : > { %1491 = vrcp.f32 %v712_v17  ;;  %v727_v27 = vand.u32 2147483648, %v712_v17  ;;  %v725_v6 = vand.u32 2147483647, %v712_v17  ;;  %vm721_vm13 = vweird.f32 %v712_v17 }
 0x60b   : > { %v728_v32 = vor.u32 1.1754944e-38, %v727_v27  ;;  %vm726_vm0 = vcmp.eq.f32.partialorder %v725_v6, 8.507059e+37 }
 0x60f   : > { %v1492_v20 = vpop.eup %1491 }
 0x610   : > { %v717_v23 = vmul.f32 %v1492_v20, %v712_v17  ;;  %vm722_vm12 = vweird.f32 %v1492_v20 }
 0x611   : > { %vm723_vm15 = vmor %vm721_vm13, %vm722_vm12 }
 0x612   : > { %v718_v25 = vsub.f32 1.0, %v717_v23 }
 0x614   : > { %v719_v5 = vmul.f32 %v1492_v20, %v718_v25 }
 0x616   : > { %v720_v31 = vadd.f32 %v1492_v20, %v719_v5 }
 0x618   : > { %v724_v34 = vsel %vm723_vm15, %v1492_v20, %v720_v31 }
 0x619   : > { %v729_v35 = vsel %vm726_vm0, %v728_v32, %v724_v34 }
 0x61a   : > { %v730_v36 = vmul.f32 %v1775_v37, %v729_v35 }
 0x61b   : > { %v929_v2 = vpop.permute.xlu0 %928 }
 0x61c   : > { %1400 = vmatmul.msk.f32.vlgmr.msra.gmra.mxu3 %vm330_vm2, %v730_v36  ;;  %949 = vmatpush.msra.mxu1 %v929_v2 }
 0x61d   : > { %1407 = vmatmul.msk.f32.vlgmr.msra.gmra.mxu1 %vm330_vm2, %v901_v3  ;;  %v269_v3 = vld [vmem:[%s1617_s25 + $0x38] sm:$0xff] }
 0x61e   : > { %1110 = vmatpush.msrb.mxu0 %v269_v3 }
 0x623   : > { %v957_v57 = vpop.permute.xlu0 %956 }
 0x624   : > { %v978_v59 = vsel %vm330_vm2, %v1723_v28, %v957_v57 }
 0x64a   : > { %v868_v4 = vpop.xlane.xlu2 %867 }
 0x64b   : > { %1493 = vrcp.f32 %v868_v4  ;;  %v883_v42 = vand.u32 2147483648, %v868_v4  ;;  %v881_v45 = vand.u32 2147483647, %v868_v4  ;;  %vm877_vm4 = vweird.f32 %v868_v4 }
 0x64c   : > { %1495 = vrcp.f32 %v1569_v26  ;;  %v1209_v26 = vld [vmem:[%s1622_s28 + $0x40] sm:$0xff] }
 0x64d   : > { %v884_v16 = vor.u32 1.1754944e-38, %v883_v42  ;;  %vm882_vm6 = vcmp.eq.f32.partialorder %v881_v45, 8.507059e+37 }
 0x651   : > { %v1494_v38 = vpop.eup %1493 }
 0x652   : > { %v873_v22 = vmul.f32 %v1494_v38, %v868_v4  ;;  %v903_v39 = vpop.permute.xlu2 %902  ;;  %vm878_vm3 = vweird.f32 %v1494_v38  ;;  %v1496_v25 = vpop.eup %1495  ;;  %v267_v4 = vld [vmem:[%s1617_s25 + $0x28] sm:$0xff] }
 0x653   : > { %923 = vmatpush.msrb.mxu3 %v903_v39  ;;  %vm879_vm5 = vmor %vm877_vm4, %vm878_vm3  ;;  %v1041_v40 = vmul.f32 32.0, %v1496_v25  ;;  %1111 = vmatpush.msrb.mxu0 %v267_v4 }
 0x654   : > { %v874_v41 = vsub.f32 1.0, %v873_v22  ;;  %v263_v22 = vld [vmem:[%s1617_s25 + $0x8] sm:$0xff] }
 0x655   : > { %v1042_v27 = vsub.f32 1.0, %v1041_v40 }
 0x656   : > { %v875_v44 = vmul.f32 %v1494_v38, %v874_v41 }
 0x657   : > { %v1043_v5 = vmul.f32 %v1496_v25, %v1042_v27  ;;  %v1208_v27 = vld [vmem:[%s1622_s28 + $0x38] sm:$0xff] }
 0x658   : > { %v876_v37 = vadd.f32 %v1494_v38, %v875_v44 }
 0x659   : > { %v1044_v6 = vadd.f32 %v1496_v25, %v1043_v5 }
 0x65a   : > { %v880_v21 = vsel %vm879_vm5, %v1494_v38, %v876_v37  ;;  %v1458_v54 = vpop.permute.xlu2 %1457  ;;  %v265_v38 = vld [vmem:[%s1617_s25 + $0x18] sm:$0xff]  ;;  %s1570_s25 = smov [#allocation3]  }
 0x65b   : > { %v885_v46 = vsel %vm882_vm6, %v884_v16, %v880_v21  ;;  %v1459_v55 = vunpack.i.l.bf16 %v1458_v54  ;;  %v1460_v56 = vunpack.i.h.bf16 %v1458_v54  ;;  %1112 = vmatpush.msrb.mxu0 %v265_v38 }
 0x65c   : > { %v639_v47 = vpop.f32.mrf.mxu1  ;;  %v886_v48 = vmul.f32 %v1782_v51, %v885_v46 }
 0x65d   : > { %958 = vrot.lane.b32.xlu2 %v639_v47, %s1566_s8  ;;  %1023 = vmatpush.msrb.mxu2 %v1459_v55 }
 0x65e   : > { %1406 = vmatmul.msk.f32.vlgmr.msrb.gmra.mxu3 %vm330_vm2, %v886_v48  ;;  %1113 = vmatpush.msrb.mxu0 %v263_v22  ;;  %v1202_v22 = vld [vmem:[%s1622_s28 + $0x8] sm:$0xff] }
 0x65f   : > { %1024 = vmatpush.msrb.mxu2 %v1460_v56  ;;  %v1088_v56 = vperm.slane %v1654_v8, 5 }
 0x664   : > { %v795_v50 = vpop.f32.mrf.mxu1 }
 0x69a   : > { %v951_v14 = vpop.f32.mrf.mxu1 }
 0x69f   : > { %v769_v49 = vpop.f32.mrf.mxu3 }
 0x6a0   : > { %964 = vrot.lane.b32.xlu1 %v769_v49, %s1567_s9 }
 0x6a8   : > { %966 = vrot.lane.b32.xlu1 %v795_v50, %s1567_s9 }
 0x6b7   : > { %v959_v63 = vpop.permute.xlu2 %958 }
 0x6b8   : > { %v979_v1 = vsel %vm330_vm2, %v1725_v29, %v959_v63  ;;  %vm1045_vm2 = vweird.f32 %v1496_v25  ;;  %v1837_v63 = vld [vmem:[%s1627_s7 + $0x8] sm:$0x3] }
 0x6e1   : > { %v925_v51 = vpop.f32.mrf.mxu3 }
 0x6e2   : > { %972 = vrot.lane.b32.xlu0 %v925_v51, %s1568_s10 }
 0x6ea   : > { %974 = vrot.lane.b32.xlu0 %v951_v14, %s1568_s10 }
 0x712   : > { %v965_v58 = vpop.permute.xlu1 %964 }
 0x713   : > { %v981_v60 = vsel %vm980_vm7, %v978_v59, %v965_v58 }
 0x71a   : > { %v967_v0 = vpop.permute.xlu1 %966 }
 0x71b   : > { %v982_v9 = vsel %vm980_vm7, %v979_v1, %v967_v0  ;;  %v1216_v0 = vld [vmem:[%s1622_s28 + $0x78] sm:$0xff]  ;;  %v1215_v1 = vld [vmem:[%s1622_s28 + $0x70] sm:$0xff] }
 0x71c   : > { %1218 = vmatpush.msra.mxu3 %v1216_v0 }
 0x71e   : > { %1219 = vmatpush.msra.mxu3 %v1215_v1 }
 0x754   : > { %v973_v61 = vpop.permute.xlu0 %972 }
 0x755   : > { %v984_v62 = vsel %vm983_vm8, %v981_v60, %v973_v61 }
 0x756   : > { %1408 = vmatmul.msk.f32.vlgmr.msrb.gmra.mxu2 %vm272_vm1, %v984_v62 }
 0x75c   : > { %v975_v12 = vpop.permute.xlu0 %974 }
 0x75d   : > { %v985_v13 = vsel %vm983_vm8, %v982_v9, %v975_v12  ;;  %v1091_v9 = vperm.slane %v1837_v63, 1  ;;  %v1214_v12 = vld [vmem:[%s1622_s28 + $0x68] sm:$0xff] }
 0x75e   : > { %1409 = vmatmul.msk.f32.gmra.mxu2 %vm272_vm1, %v985_v13  ;;  %1220 = vmatpush.msra.mxu3 %v1214_v12 }
 0x7d9   : > { %v1026_v17 = vpop.f32.mrf.mxu2 }
 0x7da   : > { %v1027_v18 = vadd.f32 %v1026_v17, %v986_v15 }
 0x7dc   : > { %v1032_v28 = vadd.f32 %v1027_v18, %v1659_v10  ;;  %v1814_v10 = vsel %vm1045_vm2, %v1496_v25, %v1044_v6  ;;  %v1212_v18 = vld [vmem:[%s1622_s28 + $0x58] sm:$0xff]  ;;  %v1207_v6 = vld [vmem:[%s1622_s28 + $0x30] sm:$0xff] }
 0x7de   : > { %v1034_v19 = vsel %vm272_vm1, %v1032_v28, 0.0 }
 0x7df   : > { %1035 = vadd.xlane.f32.xlu2 %v1034_v19  ;;  %v1211_v19 = vld [vmem:[%s1622_s28 + $0x50] sm:$0xff] }
 0x7e1   : > { %v1029_v20 = vpop.f32.mrf.mxu2 }
 0x7e2   : > { %v1030_v23 = vadd.f32 %v1029_v20, %v986_v15  ;;  %v1213_v15 = vld [vmem:[%s1622_s28 + $0x60] sm:$0xff] }
 0x7e3   : > { %1221 = vmatpush.msra.mxu3 %v1213_v15 }
 0x7e4   : > { %v1033_v24 = vadd.f32 %v1030_v23, %v1665_v11  ;;  %v1210_v23 = vld [vmem:[%s1622_s28 + $0x48] sm:$0xff] }
 0x7e5   : > { %1222 = vmatpush.msra.mxu3 %v1212_v18 }
 0x7e6   : > { %v1037_v29 = vsel %vm272_vm1, %v1033_v24, 0.0 }
 0x7e7   : > { %1038 = vadd.xlane.f32.xlu1 %v1037_v29  ;;  %1223 = vmatpush.msra.mxu3 %v1211_v19 }
 0x7e9   : > { %1224 = vmatpush.msra.mxu3 %v1210_v23 }
 0x7eb   : > { %1225 = vmatpush.msra.mxu3 %v1209_v26 }
 0x7ed   : > { %1226 = vmatpush.msra.mxu3 %v1208_v27 }
 0x7ef   : > { %1227 = vmatpush.msra.mxu3 %v1207_v6 }
 0x852   : > { %v1036_v7 = vpop.xlane.xlu2 %1035 }
 0x853   : > { %v1047_v30 = vmul.f32 %v1814_v10, %v1036_v7 }
 0x855   : > { %v1049_v11 = vsub.f32 %v1032_v28, %v1047_v30  ;;  %v1206_v30 = vld [vmem:[%s1622_s28 + $0x28] sm:$0xff] }
 0x856   : > { %1228 = vmatpush.msra.mxu3 %v1206_v30 }
 0x857   : > { %v1051_v31 = vmul.f32 %v1049_v11, %v1049_v11 }
 0x859   : > { %v1053_v32 = vsel %vm272_vm1, %v1051_v31, 0.0  ;;  %v1205_v31 = vld [vmem:[%s1622_s28 + $0x20] sm:$0xff] }
 0x85a   : > { %v1039_v33 = vpop.xlane.xlu1 %1038  ;;  %1054 = vadd.xlane.f32.xlu0 %v1053_v32  ;;  %1229 = vmatpush.msra.mxu3 %v1205_v31 }
 0x85b   : > { %v1048_v34 = vmul.f32 %v1814_v10, %v1039_v33 }
 0x85d   : > { %v1050_v35 = vsub.f32 %v1033_v24, %v1048_v34 }
 0x85f   : > { %v1052_v36 = vmul.f32 %v1050_v35, %v1050_v35 }
 0x861   : > { %v1056_v2 = vsel %vm272_vm1, %v1052_v36, 0.0 }
 0x862   : > { %1057 = vadd.xlane.f32.xlu2 %v1056_v2  ;;  %v1203_v2 = vld [vmem:[%s1622_s28 + $0x10] sm:$0xff] }
 0x8cd   : > { %v1055_v39 = vpop.xlane.xlu0 %1054 }
 0x8ce   : > { %v1059_v41 = vmul.f32 %v1055_v39, %v1814_v10  ;;  %v1201_v39 = vld [vmem:[%s1622_s28] sm:$0xff] }
 0x8d0   : > { %v1061_v42 = vadd.f32 1e-12, %v1059_v41 }
 0x8d2   : > { %1497 = vrsqrt.f32 %v1061_v42  ;;  %vm1069_vm10 = vweird.f32 %v1061_v42 }
 0x8d5   : > { %v1058_v44 = vpop.xlane.xlu2 %1057 }
 0x8d6   : > { %v1060_v45 = vmul.f32 %v1058_v44, %v1814_v10 }
 0x8d8   : > { %v1498_v37 = vpop.eup %1497  ;;  %v1062_v16 = vadd.f32 1e-12, %v1060_v45 }
 0x8d9   : > { %v1064_v21 = vmul.f32 %v1498_v37, %v1061_v42  ;;  %vm1070_vm9 = vweird.f32 %v1498_v37 }
 0x8da   : > { %1499 = vrsqrt.f32 %v1062_v16  ;;  %vm1071_vm11 = vmor %vm1069_vm10, %vm1070_vm9  ;;  %vm1079_vm13 = vweird.f32 %v1062_v16 }
 0x8db   : > { %v1065_v46 = vmul.f32 %v1498_v37, %v1064_v21 }
 0x8dd   : > { %v1066_v47 = vmul.f32 0.5, %v1065_v46 }
 0x8df   : > { %v1067_v48 = vsub.f32 1.5, %v1066_v47 }
 0x8e0   : > { %v1500_v49 = vpop.eup %1499 }
 0x8e1   : > { %v1068_v50 = vmul.f32 %v1498_v37, %v1067_v48  ;;  %v1074_v43 = vmul.f32 %v1500_v49, %v1062_v16  ;;  %vm1080_vm12 = vweird.f32 %v1500_v49 }
 0x8e2   : > { %vm1081_vm14 = vmor %vm1079_vm13, %vm1080_vm12 }
 0x8e3   : > { %v1072_v53 = vsel %vm1071_vm11, %v1498_v37, %v1068_v50  ;;  %v1075_v54 = vmul.f32 %v1500_v49, %v1074_v43 }
 0x8e4   : > { %v1083_v55 = vmul.f32 %v1072_v53, %v1049_v11 }
 0x8e5   : > { %v1076_v51 = vmul.f32 0.5, %v1075_v54 }
 0x8e6   : > { %v1086_v14 = vmul.f32 %v1085_v52, %v1083_v55 }
 0x8e7   : > { %v1077_v57 = vsub.f32 1.5, %v1076_v51 }
 0x8e8   : > { %v1828_v58 = vadd.f32 %v1088_v56, %v1086_v14 }
 0x8e9   : > { %v1078_v59 = vmul.f32 %v1500_v49, %v1077_v57 }
 0x8ea   : > { %1410 = vmatmul.msk.f32.vlgmr.msrb.gmra.mxu0 %vm272_vm1, %v1828_v58 }
 0x8eb   : > { %v1082_v60 = vsel %vm1081_vm14, %v1500_v49, %v1078_v59 }
 0x8ec   : > { %v1084_v61 = vmul.f32 %v1082_v60, %v1050_v35  ;;  %v1204_v35 = vld [vmem:[%s1622_s28 + $0x18] sm:$0xff]  ;;  %s1302_s28 = sshll.u32 %s1570_s25, 4  ;;  %s1303_s28 = int_to_ptr.vmem [resolvable:$true] %s1302_s28 }
 0x8ed   : > { %1230 = vmatpush.msra.mxu3 %v1204_v35 }
 0x8ee   : > { %v1087_v8 = vmul.f32 %v1085_v52, %v1084_v61 }
 0x8ef   : > { %1231 = vmatpush.msra.mxu3 %v1203_v2 }
 0x8f0   : > { %v1832_v62 = vadd.f32 %v1088_v56, %v1087_v8 }
 0x8f1   : > { %1232 = vmatpush.msra.mxu3 %v1202_v22 }
 0x8f2   : > { %1411 = vmatmul.msk.f32.gmra.mxu0 %vm272_vm1, %v1832_v62 }
 0x8f3   : > { %1233 = vmatpush.msra.mxu3 %v1201_v39 }
 0x967   : > { %v1115_v13 = vpop.f32.mrf.mxu0 }
 0x968   : > { %v1844_v17 = vadd.f32 %v1115_v13, %v1091_v9 }
 0x96a   : > { %v1848_v28 = vmul.f32 0.70710677, %v1844_v17 }
 0x96c   : > { %v1125_v20 = vand.u32 2147483647, %v1848_v28  ;;  %vm1191_vm2 = vcmp.ge.f32.partialorder %v1848_v28, 0.0 }
 0x96e   : > { %v1127_v24 = vmul.f32 0.3275911, %v1125_v20  ;;  %v1179_v16 = vsub.f32 0.0, %v1125_v20 }
 0x96f   : > { %v1118_v29 = vpop.f32.mrf.mxu0 }
 0x970   : > { %v1129_v25 = vadd.f32 1.0, %v1127_v24  ;;  %v1854_v40 = vadd.f32 %v1118_v29, %v1091_v9  ;;  %v1181_v50 = vmul.f32 %v1179_v16, %v1125_v20 }
 0x972   : > { %1501 = vrcp.f32 %v1129_v25  ;;  %v1858_v5 = vmul.f32 0.70710677, %v1854_v40  ;;  %v1142_v3 = vand.u32 2147483648, %v1129_v25  ;;  %v1140_v38 = vand.u32 2147483647, %v1129_v25 }
 0x973   : > { %vm1136_vm0 = vweird.f32 %v1129_v25  ;;  %v1183_v51 = vmul.f32 1.442695, %v1181_v50 }
 0x974   : > { %v1126_v7 = vand.u32 2147483647, %v1858_v5  ;;  %v1143_v42 = vor.u32 1.1754944e-38, %v1142_v3  ;;  %vm1141_vm4 = vcmp.eq.f32.partialorder %v1140_v38, 8.507059e+37  ;;  %vm1192_vm9 = vcmp.ge.f32.partialorder %v1858_v5, 0.0  ;;  %v1873_v38 = vld [vmem:[%s1627_s7] sm:$0xff] }
 0x975   : > { %v1122_v3 = vmul.f32 0.5, %v1854_v40 }
 0x976   : > { %v1128_v11 = vmul.f32 0.3275911, %v1126_v7  ;;  %v1180_v59 = vsub.f32 0.0, %v1126_v7 }
 0x978   : > { %v1502_v32 = vpop.eup %1501  ;;  %v1130_v34 = vadd.f32 1.0, %v1128_v11  ;;  %v1182_v9 = vmul.f32 %v1180_v59, %v1126_v7  ;;  %v1121_v7 = vmul.f32 0.5, %v1844_v17  ;;  %v1217_v17 = vperm.slane %v1873_v38, 6 }
 0x979   : > { %v1132_v33 = vmul.f32 %v1502_v32, %v1129_v25  ;;  %vm1137_vm15 = vweird.f32 %v1502_v32 }
 0x97a   : > { %1503 = vrcp.f32 %v1130_v34  ;;  %vm1138_vm3 = vmor %vm1136_vm0, %vm1137_vm15  ;;  %v1157_v49 = vand.u32 2147483648, %v1130_v34  ;;  %v1155_v52 = vand.u32 2147483647, %v1130_v34  ;;  %vm1151_vm6 = vweird.f32 %v1130_v34 }
 0x97b   : > { %v1133_v36 = vsub.f32 1.0, %v1132_v33  ;;  %1505 = vpow2.f32 %v1183_v51  ;;  %v1185_v19 = vmul.f32 1.442695, %v1182_v9 }
 0x97c   : > { %v1158_v56 = vor.u32 1.1754944e-38, %v1157_v49  ;;  %vm1156_vm8 = vcmp.eq.f32.partialorder %v1155_v52, 8.507059e+37 }
 0x97d   : > { %v1134_v4 = vmul.f32 %v1502_v32, %v1133_v36  ;;  %1507 = vpow2.f32 %v1185_v19 }
 0x97f   : > { %v1135_v41 = vadd.f32 %v1502_v32, %v1134_v4 }
 0x980   : > { %v1504_v44 = vpop.eup %1503 }
 0x981   : > { %v1139_v45 = vsel %vm1138_vm3, %v1502_v32, %v1135_v41  ;;  %v1147_v21 = vmul.f32 %v1504_v44, %v1130_v34  ;;  %vm1152_vm5 = vweird.f32 %v1504_v44  ;;  %v1506_v20 = vpop.eup %1505 }
 0x982   : > { %v1144_v37 = vsel %vm1141_vm4, %v1143_v42, %v1139_v45  ;;  %vm1153_vm7 = vmor %vm1151_vm6, %vm1152_vm5 }
 0x983   : > { %v1161_v46 = vmul.f32 1.0614054, %v1144_v37  ;;  %v1148_v47 = vsub.f32 1.0, %v1147_v21  ;;  %v1508_v32 = vpop.eup %1507 }
 0x985   : > { %v1163_v48 = vadd.f32 -1.4531521, %v1161_v46  ;;  %v1149_v43 = vmul.f32 %v1504_v44, %v1148_v47 }
 0x987   : > { %v1165_v53 = vmul.f32 %v1163_v48, %v1144_v37  ;;  %v1150_v54 = vadd.f32 %v1504_v44, %v1149_v43 }
 0x989   : > { %v1167_v55 = vadd.f32 1.4214138, %v1165_v53  ;;  %v1154_v14 = vsel %vm1153_vm7, %v1504_v44, %v1150_v54 }
 0x98a   : > { %v1159_v60 = vsel %vm1156_vm8, %v1158_v56, %v1154_v14 }
 0x98b   : > { %v1169_v57 = vmul.f32 %v1167_v55, %v1144_v37  ;;  %v1162_v61 = vmul.f32 1.0614054, %v1159_v60 }
 0x98d   : > { %v1171_v8 = vadd.f32 -0.28449672, %v1169_v57  ;;  %v1164_v0 = vadd.f32 -1.4531521, %v1162_v61 }
 0x98f   : > { %v1173_v1 = vmul.f32 %v1171_v8, %v1144_v37  ;;  %v1166_v12 = vmul.f32 %v1164_v0, %v1159_v60  ;;  %v1287_v0 = vperm.slane %v1873_v38, 7 }
 0x991   : > { %v1175_v13 = vadd.f32 0.2548296, %v1173_v1  ;;  %v1168_v15 = vadd.f32 1.4214138, %v1166_v12  ;;  %v1290_v12 = vperm.slane %v1837_v63, 0 }
 0x993   : > { %v1177_v18 = vmul.f32 %v1175_v13, %v1144_v37  ;;  %v1170_v23 = vmul.f32 %v1168_v15, %v1159_v60 }
 0x995   : > { %v1187_v24 = vmul.f32 %v1506_v20, %v1177_v18  ;;  %v1172_v29 = vadd.f32 -0.28449672, %v1170_v23 }
 0x997   : > { %v1189_v26 = vsub.f32 1.0, %v1187_v24  ;;  %v1174_v25 = vmul.f32 %v1172_v29, %v1159_v60 }
 0x999   : > { %v1193_v27 = vsub.f32 0.0, %v1189_v26  ;;  %v1176_v6 = vadd.f32 0.2548296, %v1174_v25 }
 0x99b   : > { %v1195_v30 = vsel %vm1191_vm2, %v1189_v26, %v1193_v27  ;;  %v1178_v31 = vmul.f32 %v1176_v6, %v1159_v60 }
 0x99c   : > { %v1197_v11 = vadd.f32 1.0, %v1195_v30 }
 0x99d   : > { %v1188_v34 = vmul.f32 %v1508_v32, %v1178_v31 }
 0x99e   : > { %v1199_v33 = vmul.f32 %v1197_v11, %v1121_v7 }
 0x99f   : > { %v1190_v35 = vsub.f32 1.0, %v1188_v34 }
 0x9a0   : > { %1234 = vmatmul.f32.vlgmr.msra.gmra.mxu3 %v1199_v33 }
 0x9a1   : > { %v1194_v36 = vsub.f32 0.0, %v1190_v35 }
 0x9a3   : > { %v1196_v2 = vsel %vm1192_vm9, %v1190_v35, %v1194_v36 }
 0x9a4   : > { %v1198_v4 = vadd.f32 1.0, %v1196_v2 }
 0x9a6   : > { %v1200_v28 = vmul.f32 %v1198_v4, %v1122_v3 }
 0x9a8   : > { %1237 = vmatmul.f32.gmra.mxu3 %v1200_v28 }
 0xa23   : > { %v1235_v22 = vpop.f32.mrf.mxu3 }
 0xa24   : > { %v1236_v39 = vadd.f32 %v1235_v22, %v1217_v17 }
 0xa26   : > { %v1241_v41 = vadd.f32 %v1236_v39, %v1828_v58 }
 0xa28   : > { %v1243_v42 = vsel %vm272_vm1, %v1241_v41, 0.0 }
 0xa29   : > { %1244 = vadd.xlane.f32.xlu1 %v1243_v42 }
 0xa2b   : > { %v1238_v44 = vpop.f32.mrf.mxu3 }
 0xa2c   : > { %v1239_v45 = vadd.f32 %v1238_v44, %v1217_v17 }
 0xa2e   : > { %v1242_v5 = vadd.f32 %v1239_v45, %v1832_v62 }
 0xa30   : > { %v1246_v40 = vsel %vm272_vm1, %v1242_v5, 0.0 }
 0xa31   : > { %1247 = vadd.xlane.f32.xlu2 %v1246_v40 }
 0xa9c   : > { %v1245_v37 = vpop.xlane.xlu1 %1244 }
 0xa9d   : > { %v1249_v16 = vmul.f32 %v1245_v37, %v1814_v10 }
 0xa9f   : > { %v1251_v21 = vsub.f32 %v1241_v41, %v1249_v16 }
 0xaa1   : > { %v1253_v46 = vmul.f32 %v1251_v21, %v1251_v21 }
 0xaa3   : > { %v1255_v47 = vsel %vm272_vm1, %v1253_v46, 0.0 }
 0xaa4   : > { %1256 = vadd.xlane.f32.xlu0 %v1255_v47  ;;  %v1248_v48 = vpop.xlane.xlu2 %1247 }
 0xaa5   : > { %v1250_v58 = vmul.f32 %v1248_v48, %v1814_v10 }
 0xaa7   : > { %v1252_v49 = vsub.f32 %v1242_v5, %v1250_v58 }
 0xaa9   : > { %v1254_v50 = vmul.f32 %v1252_v49, %v1252_v49 }
 0xaab   : > { %v1258_v43 = vsel %vm272_vm1, %v1254_v50, 0.0 }
 0xaac   : > { %1259 = vadd.xlane.f32.xlu1 %v1258_v43 }
 0xb17   : > { %v1257_v62 = vpop.xlane.xlu0 %1256 }
 0xb18   : > { %v1261_v52 = vmul.f32 %v1257_v62, %v1814_v10 }
 0xb1a   : > { %v1263_v53 = vadd.f32 1e-12, %v1261_v52 }
 0xb1c   : > { %1509 = vrsqrt.f32 %v1263_v53  ;;  %vm1271_vm11 = vweird.f32 %v1263_v53 }
 0xb1f   : > { %v1260_v54 = vpop.xlane.xlu1 %1259 }
 0xb20   : > { %v1262_v55 = vmul.f32 %v1260_v54, %v1814_v10 }
 0xb22   : > { %v1510_v56 = vpop.eup %1509  ;;  %v1264_v14 = vadd.f32 1e-12, %v1262_v55 }
 0xb23   : > { %v1266_v51 = vmul.f32 %v1510_v56, %v1263_v53  ;;  %vm1272_vm10 = vweird.f32 %v1510_v56 }
 0xb24   : > { %1511 = vrsqrt.f32 %v1264_v14  ;;  %vm1273_vm12 = vmor %vm1271_vm11, %vm1272_vm10  ;;  %vm1281_vm14 = vweird.f32 %v1264_v14 }
 0xb25   : > { %v1267_v57 = vmul.f32 %v1510_v56, %v1266_v51 }
 0xb27   : > { %v1268_v59 = vmul.f32 0.5, %v1267_v57 }
 0xb29   : > { %v1269_v60 = vsub.f32 1.5, %v1268_v59 }
 0xb2a   : > { %v1512_v61 = vpop.eup %1511 }
 0xb2b   : > { %v1270_v8 = vmul.f32 %v1510_v56, %v1269_v60  ;;  %v1276_v1 = vmul.f32 %v1512_v61, %v1264_v14  ;;  %vm1282_vm13 = vweird.f32 %v1512_v61 }
 0xb2c   : > { %vm1283_vm15 = vmor %vm1281_vm14, %vm1282_vm13 }
 0xb2d   : > { %v1274_v9 = vsel %vm1273_vm12, %v1510_v56, %v1270_v8  ;;  %v1277_v10 = vmul.f32 %v1512_v61, %v1276_v1 }
 0xb2e   : > { %v1285_v13 = vmul.f32 %v1274_v9, %v1251_v21 }
 0xb2f   : > { %v1278_v18 = vmul.f32 0.5, %v1277_v10 }
 0xb30   : > { %v1288_v15 = vmul.f32 %v1287_v0, %v1285_v13 }
 0xb31   : > { %v1279_v19 = vsub.f32 1.5, %v1278_v18 }
 0xb32   : > { %v1291_v20 = vadd.f32 %v1290_v12, %v1288_v15 }
 0xb33   : > { %v1280_v23 = vmul.f32 %v1512_v61, %v1279_v19 }
 0xb34   : > { %1293 = vst.msk [vmem:[#allocation2] sm:$0xff] %vm272_vm1, %v1291_v20 }
 0xb35   : > { %1295 = vst.msk [vmem:[#allocation3] sm:$0xff] %vm272_vm1, %v1291_v20  ;;  %v1284_v24 = vsel %vm1283_vm15, %v1512_v61, %v1280_v23 }
 0xb36   : > { %v1286_v29 = vmul.f32 %v1284_v24, %v1252_v49 }
 0xb38   : > { %v1289_v63 = vmul.f32 %v1287_v0, %v1286_v29 }
 0xb3a   : > { %v1292_v26 = vadd.f32 %v1290_v12, %v1289_v63 }
 0xb3c   : > { %1294 = vst.msk [vmem:[#allocation2 + $0x8] sm:$0xff] %vm272_vm1, %v1292_v26 }
 0xb3d   : > { %1296 = vst.msk [vmem:[#allocation3 + $0x8] sm:$0xff] %vm272_vm1, %v1292_v26 }
 0xb3e   : > { %1420 = dma.vmem_to_hbm [thread:$0]  (%p1423_p5), %s1303_s28, 256, %s1305_s12, [#allocation4], %s1571_s13, %s1571_s13, %s1566_s8  }
 0xb3f   : > { %1547 = dma.done.wait (%p1423_p5), [#allocation4], 256  }
 0xb40   : > { %1549 = vsyncadd (%p1423_p5), [#allocation4], 4294967040 }
 0xb41 PF: > { %s16_s18 = sadd.s32 1, %s1552_s18  }
 0xb42   : > { %p13_p6 = scmp.ge.s32.totalorder %s16_s18, 4  }
 0xb44   :  { %15 = sbr.rel (!%p13_p6) target bundleno = 1 (0x1), region = 77 }
 0xb49   :  { %1321 = vsyncpa [#allocation4], 1 }
 0xb4a   :  { %1323 = vsyncpa [#allocation4 + $0x1], 1 }

</bundles_post_ra>
